<compile_context>
chip_gen: v6e
topology: v6e:2x2x1
jax: 0.10.0
libtpu: 0.0.40
codegen_flags: <defaults>
</compile_context>

<pallas_src>
import jax
import jax.numpy as jnp
from jax import lax
from jax.experimental import pallas as pl
from jax.experimental.pallas import tpu as pltpu  # noqa: F401 (TPU backend)
from jax.scipy.linalg import block_diag

# ----------------------------- configuration ------------------------------
BATCH = 2
SEQ = 8
DIM = 32              # dim
DIM_HIDDEN = 64       # dim_hidden
DIM_QKV = 8           # dim_qkv
NUM_HEAD = 4          # num_head
HDQ = NUM_HEAD * DIM_QKV            # = 32 (= dim; out_weight=True anyway)
LN_EPS = 1e-5                       # nn.LayerNorm default


# ------------------------------ shared math --------------------------------
def _layernorm(x):
    m = jnp.mean(x, axis=-1, keepdims=True)
    v = jnp.mean(jnp.square(x - m), axis=-1, keepdims=True)
    return (x - m) * lax.rsqrt(v + LN_EPS)


def _silu(x):
    return x * jax.nn.sigmoid(x)


# ----------------------------- Pallas kernel -------------------------------
def _retnet_block_kernel(x_ref, wqkv_ref, bqkv_ref, wout_ref, bout_ref,
                         w1_ref, b1_ref, w2_ref, b2_ref,
                         cos_ref, sin_ref, cr_ref, ci_ref, lcp_ref, mask_ref,
                         o_ref):
    """Entire RetNetBlock forward on a (B*L, DIM) slab, fully VMEM-resident."""
    f32 = jnp.float32
    x = x_ref[...].astype(f32)                                   # (B*L, DIM)

    # ---- retention sublayer: LayerNorm -> fused QKV projection ----
    n = _layernorm(x)
    qkv = jnp.dot(n, wqkv_ref[...], preferred_element_type=f32) + bqkv_ref[...]
    q = qkv[:, :HDQ]                       # (B*L, H*Dq)
    k = qkv[:, HDQ:2 * HDQ]
    v = qkv[:, 2 * HDQ:]

    # Full-width (32-lane) rotary multiplies, hoisted out of the head loop.
    cosf = cos_ref[...]
    sinf = sin_ref[...]
    q_c = q * cosf
    q_s = q * sinf
    k_c = k * cosf
    k_s = k * sinf

    # Cross chunk for ALL heads at once:
    #   Re(sum_d q_{h,d} * phazor_h^{t+1}_d * last_conv_h[d, e])
    # = [q*Re(coef) | q*Im(coef)] @ [blockdiag(Re L); -blockdiag(Im L)]
    qc = jnp.concatenate([q * cr_ref[...], q * ci_ref[...]], axis=1)  # (B*L, 2*H*Dq)
    cross = jnp.dot(qc, lcp_ref[...], preferred_element_type=f32)     # (B*L, H*Dq)

    # Inner chunk: per-(batch, head) masked retention, fully unrolled (8 tiles).
    #   Re(qk[i,j]) = sum_d q k cos(theta*(i-j)) = [q*cos, q*sin] . [k*cos, k*sin]
    dn = (((1,), (1,)), ((), ()))          # contract last dim of both operands
    rows = []
    for b in range(BATCH):                 # static, fully unrolled
        r0 = b * SEQ
        cols = []
        for h in range(NUM_HEAD):
            c0 = h * DIM_QKV
            qr = jnp.concatenate([q_c[r0:r0 + SEQ, c0:c0 + DIM_QKV],
                                  q_s[r0:r0 + SEQ, c0:c0 + DIM_QKV]], axis=1)
            kr = jnp.concatenate([k_c[r0:r0 + SEQ, c0:c0 + DIM_QKV],
                                  k_s[r0:r0 + SEQ, c0:c0 + DIM_QKV]], axis=1)
            qk = lax.dot_general(qr, kr, dn, preferred_element_type=f32)  # (L, L)
            vh = v[r0:r0 + SEQ, c0:c0 + DIM_QKV]                          # (L, Dq)
            cols.append(jnp.dot(qk * mask_ref[h], vh,
                                preferred_element_type=f32))              # (L, Dq)
        rows.append(jnp.concatenate(cols, axis=1))                        # (L, H*Dq)
    inner = jnp.concatenate(rows, axis=0)        # (B*L, H*Dq), lane-dense (32 lanes)

    r = _silu(inner + cross)                     # Retention.act (out_weight=True)
    h1 = x + jnp.dot(r, wout_ref[...], preferred_element_type=f32) + bout_ref[...]
    # TODO(synk): nn.Dropout is identity here (inference); the stateful
    # last_conv refresh is a module side effect that does not change this output.

    # ---- FFN sublayer ----
    n2 = _layernorm(h1)
    f = _silu(jnp.dot(n2, w1_ref[...], preferred_element_type=f32) + b1_ref[...])
    out = h1 + jnp.dot(f, w2_ref[...], preferred_element_type=f32) + b2_ref[...]

    o_ref[...] = out.astype(o_ref.dtype)


@jax.jit
def retnet_block_forward(x, fused):
    """x: (B, L, DIM) -> (B, L, DIM); one pallas_call for the whole block."""
    b, l, d = x.shape
    x2 = x.reshape(b * l, d)                 # free metadata reshape in XLA
    out = pl.pallas_call(
        _retnet_block_kernel,
        out_shape=jax.ShapeDtypeStruct((b * l, d), x.dtype),
        # single invocation, no grid: every operand is a whole-array VMEM block
    )(x2,
      fused["wqkv"], fused["bqkv"], fused["wout"], fused["bout"],
      fused["w1"], fused["b1"], fused["w2"], fused["b2"],
      fused["cos"], fused["sin"], fused["cr"], fused["ci"],
      fused["lcp"], fused["mask"])
    return out.reshape(b, l, d)


# --------------------------- parameter creation ----------------------------
def _linear_params(key, fan_in, fan_out):
    kw, kb = jax.random.split(key)
    bound = 1.0 / (fan_in ** 0.5)
    w = jax.random.uniform(kw, (fan_in, fan_out), jnp.float32, -bound, bound)
    b = jax.random.uniform(kb, (1, fan_out), jnp.float32, -bound, bound)
    return w, b


def make_params(key):
    ks = jax.random.split(key, 11)
    p = {}
    p["wq_w"], p["wq_b"] = _linear_params(ks[0], DIM, HDQ)
    p["wk_w"], p["wk_b"] = _linear_params(ks[1], DIM, HDQ)
    p["wv_w"], p["wv_b"] = _linear_params(ks[2], DIM, HDQ)
    p["wout_w"], p["wout_b"] = _linear_params(ks[3], HDQ, DIM)
    p["ffn1_w"], p["ffn1_b"] = _linear_params(ks[4], DIM, DIM_HIDDEN)
    p["ffn2_w"], p["ffn2_b"] = _linear_params(ks[5], DIM, DIM_HIDDEN)[0].T * 0 + _linear_params(ks[5], DIM_HIDDEN, DIM)
    p["phazor_re"] = jax.random.normal(ks[6], (NUM_HEAD, DIM_QKV), jnp.float32)
    p["phazor_im"] = jax.random.normal(ks[7], (NUM_HEAD, DIM_QKV), jnp.float32)
    p["amplitude"] = jax.random.normal(ks[8], (NUM_HEAD,), jnp.float32)
    p["lc_re"] = jax.random.normal(ks[9], (NUM_HEAD, DIM_QKV, DIM_QKV), jnp.float32)
    p["lc_im"] = jax.random.normal(ks[10], (NUM_HEAD, DIM_QKV, DIM_QKV), jnp.float32)
    return p


# (fix the ffn2 line above cleanly)
def make_params(key):  # noqa: F811
    ks = jax.random.split(key, 11)
    p = {}
    p["wq_w"], p["wq_b"] = _linear_params(ks[0], DIM, HDQ)
    p["wk_w"], p["wk_b"] = _linear_params(ks[1], DIM, HDQ)
    p["wv_w"], p["wv_b"] = _linear_params(ks[2], DIM, HDQ)
    p["wout_w"], p["wout_b"] = _linear_params(ks[3], HDQ, DIM)
    p["ffn1_w"], p["ffn1_b"] = _linear_params(ks[4], DIM, DIM_HIDDEN)
    p["ffn2_w"], p["ffn2_b"] = _linear_params(ks[5], DIM_HIDDEN, DIM)
    p["phazor_re"] = jax.random.normal(ks[6], (NUM_HEAD, DIM_QKV), jnp.float32)
    p["phazor_im"] = jax.random.normal(ks[7], (NUM_HEAD, DIM_QKV), jnp.float32)
    p["amplitude"] = jax.random.normal(ks[8], (NUM_HEAD,), jnp.float32)
    p["lc_re"] = jax.random.normal(ks[9], (NUM_HEAD, DIM_QKV, DIM_QKV), jnp.float32)
    p["lc_im"] = jax.random.normal(ks[10], (NUM_HEAD, DIM_QKV, DIM_QKV), jnp.float32)
    return p


def fuse_params(p, batch, seq_len):
    """Parameter-only preprocessing, done ONCE (not per forward call):
    merged QKV weights, lane-dense (L, H*Dq) rotary/decay tables tiled to
    (B*L, H*Dq), block-diagonal packed last_conv, per-head decay mask."""
    theta = jnp.arctan2(p["phazor_im"], p["phazor_re"])          # angle(phazor) (H, Dq)
    amp = jax.nn.sigmoid(p["amplitude"])                          # (H,)
    t = jnp.arange(seq_len, dtype=jnp.float32)

    ang = t[:, None, None] * theta[None]                          # (L, H, Dq)
    cos_t = jnp.cos(ang).reshape(seq_len, HDQ)
    sin_t = jnp.sin(ang).reshape(seq_len, HDQ)

    ang1 = (t[:, None, None] + 1.0) * theta[None]                 # (L, H, Dq)
    a_pow = amp[None, :, None] ** (t[:, None, None] + 1.0)        # (L, H, 1)
    cr = (a_pow * jnp.cos(ang1)).reshape(seq_len, HDQ)            # Re(phazor^(t+1))
    ci = (a_pow * jnp.sin(ang1)).reshape(seq_len, HDQ)            # Im(phazor^(t+1))

    tile = lambda a: jnp.tile(a, (batch, 1))                      # (B*L, H*Dq)

    ii = jnp.arange(seq_len)
    diff = (ii[:, None] - ii[None, :]).astype(jnp.float32)
    tril = (ii[:, None] >= ii[None, :]).astype(jnp.float32)
    mask = (amp[:, None, None] ** (diff * tril)[None]) * tril[None]     # (H, L, L)

    # block-diag packed last_conv: [blockdiag(Re L); -blockdiag(Im L)] -> (2*H*Dq, H*Dq)
    lcp = jnp.concatenate([block_diag(*p["lc_re"]),
                           block_diag(*(-p["lc_im"]))], axis=0)

    return dict(
        wqkv=jnp.concatenate([p["wq_w"], p["wk_w"], p["wv_w"]], axis=1),  # (DIM, 3*H*Dq)
        bqkv=jnp.concatenate([p["wq_b"], p["wk_b"], p["wv_b"]], axis=1),  # (1, 3*H*Dq)
        wout=p["wout_w"], bout=p["wout_b"],
        w1=p["ffn1_w"], b1=p["ffn1_b"], w2=p["ffn2_w"], b2=p["ffn2_b"],
        cos=tile(cos_t), sin=tile(sin_t), cr=tile(cr), ci=tile(ci),
        lcp=lcp, mask=mask)


# ------------------------- pure-JAX reference check ------------------------
def reference_block(p, x):
    b, l, _ = x.shape
    t = jnp.arange(l)
    phazor = p["phazor_re"] + 1j * p["phazor_im"]
    phase = phazor / jnp.abs(phazor)
    amp = jax.nn.sigmoid(p["amplitude"])
    phz = phase * amp[:, None]
    lc = p["lc_re"] + 1j * p["lc_im"]

    res = x
    n = _layernorm(x)
    q = (n @ p["wq_w"] + p["wq_b"]).reshape(b, l, NUM_HEAD, DIM_QKV)
    k = (n @ p["wk_w"] + p["wk_b"]).reshape(b, l, NUM_HEAD, DIM_QKV)
    v = (n @ p["wv_w"] + p["wv_b"]).reshape(b, l, NUM_HEAD, DIM_QKV)

    pp = phase[None, :, :] ** t[:, None, None]
    ppi = phase[None, :, :] ** (-t[:, None, None])
    coeff = phz[None, :, :] ** (t[:, None, None] + 1)

    cross = jnp.einsum("blhd,lhd,hde->blhe", q.astype(jnp.complex64), coeff, lc)
    qk = jnp.einsum("bihd,ihd,bjhd,jhd->bhij",
                    q.astype(jnp.complex64), pp, k.astype(jnp.complex64), ppi)
    diff = t[:, None] - t[None, :]
    tril = (diff >= 0).astype(jnp.float32)
    mask = (amp[:, None, None] ** (diff.astype(jnp.float32) * tril)[None]) * tril[None]
    inner = jnp.einsum("bhij,hij,bjhe->bihe", qk, mask.astype(jnp.complex64),
                       v.astype(jnp.complex64))
    ret = _silu(jnp.real(inner + cross)).reshape(b, l, HDQ)
    h1 = res + (ret @ p["wout_w"] + p["wout_b"])

    res = h1
    n2 = _layernorm(h1)
    f = _silu(n2 @ p["ffn1_w"] + p["ffn1_b"])
    return res + (f @ p["ffn2_w"] + p["ffn2_b"])


# ----------------------------------- main -----------------------------------
if __name__ == "__main__":
    key = jax.random.PRNGKey(0)
    kp, kx = jax.random.split(key)
    params = make_params(kp)
    x = jax.random.normal(kx, (BATCH, SEQ, DIM), jnp.float32)

    fused = fuse_params(params, BATCH, SEQ)    # parameter-only tables, computed once

    out = retnet_block_forward(x, fused)
    out = jax.block_until_ready(out)
    assert out.shape == (BATCH, SEQ, DIM)

    ref = reference_block(params, x)
    err = float(jnp.max(jnp.abs(out - ref)))
    assert err < 5e-3, f"max abs error vs reference: {err}"

    print("KERNEL_OK")
</pallas_src>

<mosaic_0001>
module attributes {stable_mosaic.version = 11 : i64} {
  func.func @_retnet_block_kernel(%arg0: memref<16x32xf32, #tpu.memory_space<vmem>>, %arg1: memref<32x96xf32, #tpu.memory_space<vmem>>, %arg2: memref<1x96xf32, #tpu.memory_space<vmem>>, %arg3: memref<32x32xf32, #tpu.memory_space<vmem>>, %arg4: memref<1x32xf32, #tpu.memory_space<vmem>>, %arg5: memref<32x64xf32, #tpu.memory_space<vmem>>, %arg6: memref<1x64xf32, #tpu.memory_space<vmem>>, %arg7: memref<64x32xf32, #tpu.memory_space<vmem>>, %arg8: memref<1x32xf32, #tpu.memory_space<vmem>>, %arg9: memref<16x32xf32, #tpu.memory_space<vmem>>, %arg10: memref<16x32xf32, #tpu.memory_space<vmem>>, %arg11: memref<16x32xf32, #tpu.memory_space<vmem>>, %arg12: memref<16x32xf32, #tpu.memory_space<vmem>>, %arg13: memref<64x32xf32, #tpu.memory_space<vmem>>, %arg14: memref<4x8x8xf32, #tpu.memory_space<vmem>>, %arg15: memref<16x32xf32, #tpu.memory_space<vmem>>) attributes {dimension_semantics = [], scalar_prefetch = 0 : i64, scratch_operands = 0 : i64, tpu.core_type = #tpu.core_type<tc>} {
    %c0 = arith.constant 0 : index
    %c0_0 = arith.constant 0 : index
    %0 = vector.load %arg0[%c0, %c0_0] : memref<16x32xf32, #tpu.memory_space<vmem>>, vector<16x32xf32>
    %cst = arith.constant dense<0.000000e+00> : vector<16xf32>
    %1 = vector.multi_reduction <add>, %0, %cst [1] : vector<16x32xf32> to vector<16xf32>
    %2 = vector.shape_cast %1 : vector<16xf32> to vector<16x1xf32>
    %cst_1 = arith.constant 3.200000e+01 : f32
    %3 = vector.broadcast %cst_1 : f32 to vector<16x1xf32>
    %4 = arith.divf %2, %3 : vector<16x1xf32>
    %5 = vector.broadcast %4 : vector<16x1xf32> to vector<16x32xf32>
    %6 = arith.subf %0, %5 : vector<16x32xf32>
    %7 = arith.mulf %6, %6 : vector<16x32xf32>
    %cst_2 = arith.constant dense<0.000000e+00> : vector<16xf32>
    %8 = vector.multi_reduction <add>, %7, %cst_2 [1] : vector<16x32xf32> to vector<16xf32>
    %9 = vector.shape_cast %8 : vector<16xf32> to vector<16x1xf32>
    %cst_3 = arith.constant 3.200000e+01 : f32
    %10 = vector.broadcast %cst_3 : f32 to vector<16x1xf32>
    %11 = arith.divf %9, %10 : vector<16x1xf32>
    %12 = vector.broadcast %4 : vector<16x1xf32> to vector<16x32xf32>
    %13 = arith.subf %0, %12 : vector<16x32xf32>
    %cst_4 = arith.constant 9.99999974E-6 : f32
    %14 = vector.broadcast %cst_4 : f32 to vector<16x1xf32>
    %15 = arith.addf %11, %14 : vector<16x1xf32>
    %16 = math.rsqrt %15 : vector<16x1xf32>
    %17 = vector.broadcast %16 : vector<16x1xf32> to vector<16x32xf32>
    %18 = arith.mulf %13, %17 : vector<16x32xf32>
    %c0_5 = arith.constant 0 : index
    %c0_6 = arith.constant 0 : index
    %19 = vector.load %arg1[%c0_5, %c0_6] : memref<32x96xf32, #tpu.memory_space<vmem>>, vector<32x96xf32>
    %cst_7 = arith.constant dense<0.000000e+00> : vector<16x96xf32>
    %20 = tpu.matmul %18, %19, %cst_7 {dimension_numbers = #tpu.dot_dimension_numbers<[1], [0], [0], [1], [0, 0, 1, 1], [], []>} : vector<16x32xf32>, vector<32x96xf32>, vector<16x96xf32> -> vector<16x96xf32>
    %c0_8 = arith.constant 0 : index
    %c0_9 = arith.constant 0 : index
    %21 = vector.load %arg2[%c0_8, %c0_9] : memref<1x96xf32, #tpu.memory_space<vmem>>, vector<1x96xf32>
    %22 = vector.broadcast %21 : vector<1x96xf32> to vector<16x96xf32>
    %23 = arith.addf %20, %22 : vector<16x96xf32>
    %24 = vector.extract_strided_slice %23 {offsets = [0, 0], sizes = [16, 32], strides = [1, 1]} : vector<16x96xf32> to vector<16x32xf32>
    %25 = vector.extract_strided_slice %23 {offsets = [0, 32], sizes = [16, 32], strides = [1, 1]} : vector<16x96xf32> to vector<16x32xf32>
    %26 = vector.extract_strided_slice %23 {offsets = [0, 64], sizes = [16, 32], strides = [1, 1]} : vector<16x96xf32> to vector<16x32xf32>
    %c0_10 = arith.constant 0 : index
    %c0_11 = arith.constant 0 : index
    %27 = vector.load %arg9[%c0_10, %c0_11] : memref<16x32xf32, #tpu.memory_space<vmem>>, vector<16x32xf32>
    %c0_12 = arith.constant 0 : index
    %c0_13 = arith.constant 0 : index
    %28 = vector.load %arg10[%c0_12, %c0_13] : memref<16x32xf32, #tpu.memory_space<vmem>>, vector<16x32xf32>
    %29 = arith.mulf %24, %27 : vector<16x32xf32>
    %30 = arith.mulf %24, %28 : vector<16x32xf32>
    %31 = arith.mulf %25, %27 : vector<16x32xf32>
    %32 = arith.mulf %25, %28 : vector<16x32xf32>
    %c0_14 = arith.constant 0 : index
    %c0_15 = arith.constant 0 : index
    %33 = vector.load %arg11[%c0_14, %c0_15] : memref<16x32xf32, #tpu.memory_space<vmem>>, vector<16x32xf32>
    %34 = arith.mulf %24, %33 : vector<16x32xf32>
    %c0_16 = arith.constant 0 : index
    %c0_17 = arith.constant 0 : index
    %35 = vector.load %arg12[%c0_16, %c0_17] : memref<16x32xf32, #tpu.memory_space<vmem>>, vector<16x32xf32>
    %36 = arith.mulf %24, %35 : vector<16x32xf32>
    %37 = tpu.concatenate %34, %36 in 1 : vector<16x32xf32>, vector<16x32xf32> -> vector<16x64xf32>
    %c0_18 = arith.constant 0 : index
    %c0_19 = arith.constant 0 : index
    %38 = vector.load %arg13[%c0_18, %c0_19] : memref<64x32xf32, #tpu.memory_space<vmem>>, vector<64x32xf32>
    %cst_20 = arith.constant dense<0.000000e+00> : vector<16x32xf32>
    %39 = tpu.matmul %37, %38, %cst_20 {dimension_numbers = #tpu.dot_dimension_numbers<[1], [0], [0], [1], [0, 0, 1, 1], [], []>} : vector<16x64xf32>, vector<64x32xf32>, vector<16x32xf32> -> vector<16x32xf32>
    %40 = vector.extract_strided_slice %29 {offsets = [0, 0], sizes = [8, 8], strides = [1, 1]} : vector<16x32xf32> to vector<8x8xf32>
    %41 = vector.extract_strided_slice %30 {offsets = [0, 0], sizes = [8, 8], strides = [1, 1]} : vector<16x32xf32> to vector<8x8xf32>
    %42 = tpu.concatenate %40, %41 in 1 : vector<8x8xf32>, vector<8x8xf32> -> vector<8x16xf32>
    %43 = vector.extract_strided_slice %31 {offsets = [0, 0], sizes = [8, 8], strides = [1, 1]} : vector<16x32xf32> to vector<8x8xf32>
    %44 = vector.extract_strided_slice %32 {offsets = [0, 0], sizes = [8, 8], strides = [1, 1]} : vector<16x32xf32> to vector<8x8xf32>
    %45 = tpu.concatenate %43, %44 in 1 : vector<8x8xf32>, vector<8x8xf32> -> vector<8x16xf32>
    %cst_21 = arith.constant dense<0.000000e+00> : vector<8x8xf32>
    %46 = tpu.matmul %42, %45, %cst_21 {dimension_numbers = #tpu.dot_dimension_numbers<[1], [1], [0], [0], [0, 0, 1, 0], [], []>} : vector<8x16xf32>, vector<8x16xf32>, vector<8x8xf32> -> vector<8x8xf32>
    %47 = vector.extract_strided_slice %26 {offsets = [0, 0], sizes = [8, 8], strides = [1, 1]} : vector<16x32xf32> to vector<8x8xf32>
    %c0_22 = arith.constant 0 : index
    %c0_23 = arith.constant 0 : index
    %c0_24 = arith.constant 0 : index
    %48 = vector.load %arg14[%c0_22, %c0_23, %c0_24] : memref<4x8x8xf32, #tpu.memory_space<vmem>>, vector<1x8x8xf32>
    %49 = vector.shape_cast %48 : vector<1x8x8xf32> to vector<8x8xf32>
    %50 = arith.mulf %46, %49 : vector<8x8xf32>
    %cst_25 = arith.constant dense<0.000000e+00> : vector<8x8xf32>
    %51 = tpu.matmul %50, %47, %cst_25 {dimension_numbers = #tpu.dot_dimension_numbers<[1], [0], [0], [1], [0, 0, 1, 1], [], []>} : vector<8x8xf32>, vector<8x8xf32>, vector<8x8xf32> -> vector<8x8xf32>
    %52 = vector.extract_strided_slice %29 {offsets = [0, 8], sizes = [8, 8], strides = [1, 1]} : vector<16x32xf32> to vector<8x8xf32>
    %53 = vector.extract_strided_slice %30 {offsets = [0, 8], sizes = [8, 8], strides = [1, 1]} : vector<16x32xf32> to vector<8x8xf32>
    %54 = tpu.concatenate %52, %53 in 1 : vector<8x8xf32>, vector<8x8xf32> -> vector<8x16xf32>
    %55 = vector.extract_strided_slice %31 {offsets = [0, 8], sizes = [8, 8], strides = [1, 1]} : vector<16x32xf32> to vector<8x8xf32>
    %56 = vector.extract_strided_slice %32 {offsets = [0, 8], sizes = [8, 8], strides = [1, 1]} : vector<16x32xf32> to vector<8x8xf32>
    %57 = tpu.concatenate %55, %56 in 1 : vector<8x8xf32>, vector<8x8xf32> -> vector<8x16xf32>
    %cst_26 = arith.constant dense<0.000000e+00> : vector<8x8xf32>
    %58 = tpu.matmul %54, %57, %cst_26 {dimension_numbers = #tpu.dot_dimension_numbers<[1], [1], [0], [0], [0, 0, 1, 0], [], []>} : vector<8x16xf32>, vector<8x16xf32>, vector<8x8xf32> -> vector<8x8xf32>
    %59 = vector.extract_strided_slice %26 {offsets = [0, 8], sizes = [8, 8], strides = [1, 1]} : vector<16x32xf32> to vector<8x8xf32>
    %c1 = arith.constant 1 : index
    %c0_27 = arith.constant 0 : index
    %c0_28 = arith.constant 0 : index
    %60 = vector.load %arg14[%c1, %c0_27, %c0_28] : memref<4x8x8xf32, #tpu.memory_space<vmem>>, vector<1x8x8xf32>
    %61 = vector.shape_cast %60 : vector<1x8x8xf32> to vector<8x8xf32>
    %62 = arith.mulf %58, %61 : vector<8x8xf32>
    %cst_29 = arith.constant dense<0.000000e+00> : vector<8x8xf32>
    %63 = tpu.matmul %62, %59, %cst_29 {dimension_numbers = #tpu.dot_dimension_numbers<[1], [0], [0], [1], [0, 0, 1, 1], [], []>} : vector<8x8xf32>, vector<8x8xf32>, vector<8x8xf32> -> vector<8x8xf32>
    %64 = vector.extract_strided_slice %29 {offsets = [0, 16], sizes = [8, 8], strides = [1, 1]} : vector<16x32xf32> to vector<8x8xf32>
    %65 = vector.extract_strided_slice %30 {offsets = [0, 16], sizes = [8, 8], strides = [1, 1]} : vector<16x32xf32> to vector<8x8xf32>
    %66 = tpu.concatenate %64, %65 in 1 : vector<8x8xf32>, vector<8x8xf32> -> vector<8x16xf32>
    %67 = vector.extract_strided_slice %31 {offsets = [0, 16], sizes = [8, 8], strides = [1, 1]} : vector<16x32xf32> to vector<8x8xf32>
    %68 = vector.extract_strided_slice %32 {offsets = [0, 16], sizes = [8, 8], strides = [1, 1]} : vector<16x32xf32> to vector<8x8xf32>
    %69 = tpu.concatenate %67, %68 in 1 : vector<8x8xf32>, vector<8x8xf32> -> vector<8x16xf32>
    %cst_30 = arith.constant dense<0.000000e+00> : vector<8x8xf32>
    %70 = tpu.matmul %66, %69, %cst_30 {dimension_numbers = #tpu.dot_dimension_numbers<[1], [1], [0], [0], [0, 0, 1, 0], [], []>} : vector<8x16xf32>, vector<8x16xf32>, vector<8x8xf32> -> vector<8x8xf32>
    %71 = vector.extract_strided_slice %26 {offsets = [0, 16], sizes = [8, 8], strides = [1, 1]} : vector<16x32xf32> to vector<8x8xf32>
    %c2 = arith.constant 2 : index
    %c0_31 = arith.constant 0 : index
    %c0_32 = arith.constant 0 : index
    %72 = vector.load %arg14[%c2, %c0_31, %c0_32] : memref<4x8x8xf32, #tpu.memory_space<vmem>>, vector<1x8x8xf32>
    %73 = vector.shape_cast %72 : vector<1x8x8xf32> to vector<8x8xf32>
    %74 = arith.mulf %70, %73 : vector<8x8xf32>
    %cst_33 = arith.constant dense<0.000000e+00> : vector<8x8xf32>
    %75 = tpu.matmul %74, %71, %cst_33 {dimension_numbers = #tpu.dot_dimension_numbers<[1], [0], [0], [1], [0, 0, 1, 1], [], []>} : vector<8x8xf32>, vector<8x8xf32>, vector<8x8xf32> -> vector<8x8xf32>
    %76 = vector.extract_strided_slice %29 {offsets = [0, 24], sizes = [8, 8], strides = [1, 1]} : vector<16x32xf32> to vector<8x8xf32>
    %77 = vector.extract_strided_slice %30 {offsets = [0, 24], sizes = [8, 8], strides = [1, 1]} : vector<16x32xf32> to vector<8x8xf32>
    %78 = tpu.concatenate %76, %77 in 1 : vector<8x8xf32>, vector<8x8xf32> -> vector<8x16xf32>
    %79 = vector.extract_strided_slice %31 {offsets = [0, 24], sizes = [8, 8], strides = [1, 1]} : vector<16x32xf32> to vector<8x8xf32>
    %80 = vector.extract_strided_slice %32 {offsets = [0, 24], sizes = [8, 8], strides = [1, 1]} : vector<16x32xf32> to vector<8x8xf32>
    %81 = tpu.concatenate %79, %80 in 1 : vector<8x8xf32>, vector<8x8xf32> -> vector<8x16xf32>
    %cst_34 = arith.constant dense<0.000000e+00> : vector<8x8xf32>
    %82 = tpu.matmul %78, %81, %cst_34 {dimension_numbers = #tpu.dot_dimension_numbers<[1], [1], [0], [0], [0, 0, 1, 0], [], []>} : vector<8x16xf32>, vector<8x16xf32>, vector<8x8xf32> -> vector<8x8xf32>
    %83 = vector.extract_strided_slice %26 {offsets = [0, 24], sizes = [8, 8], strides = [1, 1]} : vector<16x32xf32> to vector<8x8xf32>
    %c3 = arith.constant 3 : index
    %c0_35 = arith.constant 0 : index
    %c0_36 = arith.constant 0 : index
    %84 = vector.load %arg14[%c3, %c0_35, %c0_36] : memref<4x8x8xf32, #tpu.memory_space<vmem>>, vector<1x8x8xf32>
    %85 = vector.shape_cast %84 : vector<1x8x8xf32> to vector<8x8xf32>
    %86 = arith.mulf %82, %85 : vector<8x8xf32>
    %cst_37 = arith.constant dense<0.000000e+00> : vector<8x8xf32>
    %87 = tpu.matmul %86, %83, %cst_37 {dimension_numbers = #tpu.dot_dimension_numbers<[1], [0], [0], [1], [0, 0, 1, 1], [], []>} : vector<8x8xf32>, vector<8x8xf32>, vector<8x8xf32> -> vector<8x8xf32>
    %88 = tpu.concatenate %51, %63, %75, %87 in 1 : vector<8x8xf32>, vector<8x8xf32>, vector<8x8xf32>, vector<8x8xf32> -> vector<8x32xf32>
    %89 = vector.extract_strided_slice %29 {offsets = [8, 0], sizes = [8, 8], strides = [1, 1]} : vector<16x32xf32> to vector<8x8xf32>
    %90 = vector.extract_strided_slice %30 {offsets = [8, 0], sizes = [8, 8], strides = [1, 1]} : vector<16x32xf32> to vector<8x8xf32>
    %91 = tpu.concatenate %89, %90 in 1 : vector<8x8xf32>, vector<8x8xf32> -> vector<8x16xf32>
    %92 = vector.extract_strided_slice %31 {offsets = [8, 0], sizes = [8, 8], strides = [1, 1]} : vector<16x32xf32> to vector<8x8xf32>
    %93 = vector.extract_strided_slice %32 {offsets = [8, 0], sizes = [8, 8], strides = [1, 1]} : vector<16x32xf32> to vector<8x8xf32>
    %94 = tpu.concatenate %92, %93 in 1 : vector<8x8xf32>, vector<8x8xf32> -> vector<8x16xf32>
    %cst_38 = arith.constant dense<0.000000e+00> : vector<8x8xf32>
    %95 = tpu.matmul %91, %94, %cst_38 {dimension_numbers = #tpu.dot_dimension_numbers<[1], [1], [0], [0], [0, 0, 1, 0], [], []>} : vector<8x16xf32>, vector<8x16xf32>, vector<8x8xf32> -> vector<8x8xf32>
    %96 = vector.extract_strided_slice %26 {offsets = [8, 0], sizes = [8, 8], strides = [1, 1]} : vector<16x32xf32> to vector<8x8xf32>
    %c0_39 = arith.constant 0 : index
    %c0_40 = arith.constant 0 : index
    %c0_41 = arith.constant 0 : index
    %97 = vector.load %arg14[%c0_39, %c0_40, %c0_41] : memref<4x8x8xf32, #tpu.memory_space<vmem>>, vector<1x8x8xf32>
    %98 = vector.shape_cast %97 : vector<1x8x8xf32> to vector<8x8xf32>
    %99 = arith.mulf %95, %98 : vector<8x8xf32>
    %cst_42 = arith.constant dense<0.000000e+00> : vector<8x8xf32>
    %100 = tpu.matmul %99, %96, %cst_42 {dimension_numbers = #tpu.dot_dimension_numbers<[1], [0], [0], [1], [0, 0, 1, 1], [], []>} : vector<8x8xf32>, vector<8x8xf32>, vector<8x8xf32> -> vector<8x8xf32>
    %101 = vector.extract_strided_slice %29 {offsets = [8, 8], sizes = [8, 8], strides = [1, 1]} : vector<16x32xf32> to vector<8x8xf32>
    %102 = vector.extract_strided_slice %30 {offsets = [8, 8], sizes = [8, 8], strides = [1, 1]} : vector<16x32xf32> to vector<8x8xf32>
    %103 = tpu.concatenate %101, %102 in 1 : vector<8x8xf32>, vector<8x8xf32> -> vector<8x16xf32>
    %104 = vector.extract_strided_slice %31 {offsets = [8, 8], sizes = [8, 8], strides = [1, 1]} : vector<16x32xf32> to vector<8x8xf32>
    %105 = vector.extract_strided_slice %32 {offsets = [8, 8], sizes = [8, 8], strides = [1, 1]} : vector<16x32xf32> to vector<8x8xf32>
    %106 = tpu.concatenate %104, %105 in 1 : vector<8x8xf32>, vector<8x8xf32> -> vector<8x16xf32>
    %cst_43 = arith.constant dense<0.000000e+00> : vector<8x8xf32>
    %107 = tpu.matmul %103, %106, %cst_43 {dimension_numbers = #tpu.dot_dimension_numbers<[1], [1], [0], [0], [0, 0, 1, 0], [], []>} : vector<8x16xf32>, vector<8x16xf32>, vector<8x8xf32> -> vector<8x8xf32>
    %108 = vector.extract_strided_slice %26 {offsets = [8, 8], sizes = [8, 8], strides = [1, 1]} : vector<16x32xf32> to vector<8x8xf32>
    %c1_44 = arith.constant 1 : index
    %c0_45 = arith.constant 0 : index
    %c0_46 = arith.constant 0 : index
    %109 = vector.load %arg14[%c1_44, %c0_45, %c0_46] : memref<4x8x8xf32, #tpu.memory_space<vmem>>, vector<1x8x8xf32>
    %110 = vector.shape_cast %109 : vector<1x8x8xf32> to vector<8x8xf32>
    %111 = arith.mulf %107, %110 : vector<8x8xf32>
    %cst_47 = arith.constant dense<0.000000e+00> : vector<8x8xf32>
    %112 = tpu.matmul %111, %108, %cst_47 {dimension_numbers = #tpu.dot_dimension_numbers<[1], [0], [0], [1], [0, 0, 1, 1], [], []>} : vector<8x8xf32>, vector<8x8xf32>, vector<8x8xf32> -> vector<8x8xf32>
    %113 = vector.extract_strided_slice %29 {offsets = [8, 16], sizes = [8, 8], strides = [1, 1]} : vector<16x32xf32> to vector<8x8xf32>
    %114 = vector.extract_strided_slice %30 {offsets = [8, 16], sizes = [8, 8], strides = [1, 1]} : vector<16x32xf32> to vector<8x8xf32>
    %115 = tpu.concatenate %113, %114 in 1 : vector<8x8xf32>, vector<8x8xf32> -> vector<8x16xf32>
    %116 = vector.extract_strided_slice %31 {offsets = [8, 16], sizes = [8, 8], strides = [1, 1]} : vector<16x32xf32> to vector<8x8xf32>
    %117 = vector.extract_strided_slice %32 {offsets = [8, 16], sizes = [8, 8], strides = [1, 1]} : vector<16x32xf32> to vector<8x8xf32>
    %118 = tpu.concatenate %116, %117 in 1 : vector<8x8xf32>, vector<8x8xf32> -> vector<8x16xf32>
    %cst_48 = arith.constant dense<0.000000e+00> : vector<8x8xf32>
    %119 = tpu.matmul %115, %118, %cst_48 {dimension_numbers = #tpu.dot_dimension_numbers<[1], [1], [0], [0], [0, 0, 1, 0], [], []>} : vector<8x16xf32>, vector<8x16xf32>, vector<8x8xf32> -> vector<8x8xf32>
    %120 = vector.extract_strided_slice %26 {offsets = [8, 16], sizes = [8, 8], strides = [1, 1]} : vector<16x32xf32> to vector<8x8xf32>
    %c2_49 = arith.constant 2 : index
    %c0_50 = arith.constant 0 : index
    %c0_51 = arith.constant 0 : index
    %121 = vector.load %arg14[%c2_49, %c0_50, %c0_51] : memref<4x8x8xf32, #tpu.memory_space<vmem>>, vector<1x8x8xf32>
    %122 = vector.shape_cast %121 : vector<1x8x8xf32> to vector<8x8xf32>
    %123 = arith.mulf %119, %122 : vector<8x8xf32>
    %cst_52 = arith.constant dense<0.000000e+00> : vector<8x8xf32>
    %124 = tpu.matmul %123, %120, %cst_52 {dimension_numbers = #tpu.dot_dimension_numbers<[1], [0], [0], [1], [0, 0, 1, 1], [], []>} : vector<8x8xf32>, vector<8x8xf32>, vector<8x8xf32> -> vector<8x8xf32>
    %125 = vector.extract_strided_slice %29 {offsets = [8, 24], sizes = [8, 8], strides = [1, 1]} : vector<16x32xf32> to vector<8x8xf32>
    %126 = vector.extract_strided_slice %30 {offsets = [8, 24], sizes = [8, 8], strides = [1, 1]} : vector<16x32xf32> to vector<8x8xf32>
    %127 = tpu.concatenate %125, %126 in 1 : vector<8x8xf32>, vector<8x8xf32> -> vector<8x16xf32>
    %128 = vector.extract_strided_slice %31 {offsets = [8, 24], sizes = [8, 8], strides = [1, 1]} : vector<16x32xf32> to vector<8x8xf32>
    %129 = vector.extract_strided_slice %32 {offsets = [8, 24], sizes = [8, 8], strides = [1, 1]} : vector<16x32xf32> to vector<8x8xf32>
    %130 = tpu.concatenate %128, %129 in 1 : vector<8x8xf32>, vector<8x8xf32> -> vector<8x16xf32>
    %cst_53 = arith.constant dense<0.000000e+00> : vector<8x8xf32>
    %131 = tpu.matmul %127, %130, %cst_53 {dimension_numbers = #tpu.dot_dimension_numbers<[1], [1], [0], [0], [0, 0, 1, 0], [], []>} : vector<8x16xf32>, vector<8x16xf32>, vector<8x8xf32> -> vector<8x8xf32>
    %132 = vector.extract_strided_slice %26 {offsets = [8, 24], sizes = [8, 8], strides = [1, 1]} : vector<16x32xf32> to vector<8x8xf32>
    %c3_54 = arith.constant 3 : index
    %c0_55 = arith.constant 0 : index
    %c0_56 = arith.constant 0 : index
    %133 = vector.load %arg14[%c3_54, %c0_55, %c0_56] : memref<4x8x8xf32, #tpu.memory_space<vmem>>, vector<1x8x8xf32>
    %134 = vector.shape_cast %133 : vector<1x8x8xf32> to vector<8x8xf32>
    %135 = arith.mulf %131, %134 : vector<8x8xf32>
    %cst_57 = arith.constant dense<0.000000e+00> : vector<8x8xf32>
    %136 = tpu.matmul %135, %132, %cst_57 {dimension_numbers = #tpu.dot_dimension_numbers<[1], [0], [0], [1], [0, 0, 1, 1], [], []>} : vector<8x8xf32>, vector<8x8xf32>, vector<8x8xf32> -> vector<8x8xf32>
    %137 = tpu.concatenate %100, %112, %124, %136 in 1 : vector<8x8xf32>, vector<8x8xf32>, vector<8x8xf32>, vector<8x8xf32> -> vector<8x32xf32>
    %138 = tpu.concatenate %88, %137 in 0 : vector<8x32xf32>, vector<8x32xf32> -> vector<16x32xf32>
    %139 = arith.addf %138, %39 : vector<16x32xf32>
    %140 = arith.negf %139 : vector<16x32xf32>
    %141 = math.exp %140 : vector<16x32xf32>
    %cst_58 = arith.constant 1.000000e+00 : f32
    %142 = vector.broadcast %cst_58 : f32 to vector<16x32xf32>
    %143 = arith.addf %142, %141 : vector<16x32xf32>
    %144 = arith.divf %142, %143 : vector<16x32xf32>
    %145 = arith.mulf %139, %144 : vector<16x32xf32>
    %c0_59 = arith.constant 0 : index
    %c0_60 = arith.constant 0 : index
    %146 = vector.load %arg3[%c0_59, %c0_60] : memref<32x32xf32, #tpu.memory_space<vmem>>, vector<32x32xf32>
    %cst_61 = arith.constant dense<0.000000e+00> : vector<16x32xf32>
    %147 = tpu.matmul %145, %146, %cst_61 {dimension_numbers = #tpu.dot_dimension_numbers<[1], [0], [0], [1], [0, 0, 1, 1], [], []>} : vector<16x32xf32>, vector<32x32xf32>, vector<16x32xf32> -> vector<16x32xf32>
    %148 = arith.addf %0, %147 : vector<16x32xf32>
    %c0_62 = arith.constant 0 : index
    %c0_63 = arith.constant 0 : index
    %149 = vector.load %arg4[%c0_62, %c0_63] : memref<1x32xf32, #tpu.memory_space<vmem>>, vector<1x32xf32>
    %150 = vector.broadcast %149 : vector<1x32xf32> to vector<16x32xf32>
    %151 = arith.addf %148, %150 : vector<16x32xf32>
    %cst_64 = arith.constant dense<0.000000e+00> : vector<16xf32>
    %152 = vector.multi_reduction <add>, %151, %cst_64 [1] : vector<16x32xf32> to vector<16xf32>
    %153 = vector.shape_cast %152 : vector<16xf32> to vector<16x1xf32>
    %cst_65 = arith.constant 3.200000e+01 : f32
    %154 = vector.broadcast %cst_65 : f32 to vector<16x1xf32>
    %155 = arith.divf %153, %154 : vector<16x1xf32>
    %156 = vector.broadcast %155 : vector<16x1xf32> to vector<16x32xf32>
    %157 = arith.subf %151, %156 : vector<16x32xf32>
    %158 = arith.mulf %157, %157 : vector<16x32xf32>
    %cst_66 = arith.constant dense<0.000000e+00> : vector<16xf32>
    %159 = vector.multi_reduction <add>, %158, %cst_66 [1] : vector<16x32xf32> to vector<16xf32>
    %160 = vector.shape_cast %159 : vector<16xf32> to vector<16x1xf32>
    %cst_67 = arith.constant 3.200000e+01 : f32
    %161 = vector.broadcast %cst_67 : f32 to vector<16x1xf32>
    %162 = arith.divf %160, %161 : vector<16x1xf32>
    %163 = vector.broadcast %155 : vector<16x1xf32> to vector<16x32xf32>
    %164 = arith.subf %151, %163 : vector<16x32xf32>
    %cst_68 = arith.constant 9.99999974E-6 : f32
    %165 = vector.broadcast %cst_68 : f32 to vector<16x1xf32>
    %166 = arith.addf %162, %165 : vector<16x1xf32>
    %167 = math.rsqrt %166 : vector<16x1xf32>
    %168 = vector.broadcast %167 : vector<16x1xf32> to vector<16x32xf32>
    %169 = arith.mulf %164, %168 : vector<16x32xf32>
    %c0_69 = arith.constant 0 : index
    %c0_70 = arith.constant 0 : index
    %170 = vector.load %arg5[%c0_69, %c0_70] : memref<32x64xf32, #tpu.memory_space<vmem>>, vector<32x64xf32>
    %cst_71 = arith.constant dense<0.000000e+00> : vector<16x64xf32>
    %171 = tpu.matmul %169, %170, %cst_71 {dimension_numbers = #tpu.dot_dimension_numbers<[1], [0], [0], [1], [0, 0, 1, 1], [], []>} : vector<16x32xf32>, vector<32x64xf32>, vector<16x64xf32> -> vector<16x64xf32>
    %c0_72 = arith.constant 0 : index
    %c0_73 = arith.constant 0 : index
    %172 = vector.load %arg6[%c0_72, %c0_73] : memref<1x64xf32, #tpu.memory_space<vmem>>, vector<1x64xf32>
    %173 = vector.broadcast %172 : vector<1x64xf32> to vector<16x64xf32>
    %174 = arith.addf %171, %173 : vector<16x64xf32>
    %175 = arith.negf %174 : vector<16x64xf32>
    %176 = math.exp %175 : vector<16x64xf32>
    %cst_74 = arith.constant 1.000000e+00 : f32
    %177 = vector.broadcast %cst_74 : f32 to vector<16x64xf32>
    %178 = arith.addf %177, %176 : vector<16x64xf32>
    %179 = arith.divf %177, %178 : vector<16x64xf32>
    %180 = arith.mulf %174, %179 : vector<16x64xf32>
    %c0_75 = arith.constant 0 : index
    %c0_76 = arith.constant 0 : index
    %181 = vector.load %arg7[%c0_75, %c0_76] : memref<64x32xf32, #tpu.memory_space<vmem>>, vector<64x32xf32>
    %cst_77 = arith.constant dense<0.000000e+00> : vector<16x32xf32>
    %182 = tpu.matmul %180, %181, %cst_77 {dimension_numbers = #tpu.dot_dimension_numbers<[1], [0], [0], [1], [0, 0, 1, 1], [], []>} : vector<16x64xf32>, vector<64x32xf32>, vector<16x32xf32> -> vector<16x32xf32>
    %183 = arith.addf %151, %182 : vector<16x32xf32>
    %c0_78 = arith.constant 0 : index
    %c0_79 = arith.constant 0 : index
    %184 = vector.load %arg8[%c0_78, %c0_79] : memref<1x32xf32, #tpu.memory_space<vmem>>, vector<1x32xf32>
    %185 = vector.broadcast %184 : vector<1x32xf32> to vector<16x32xf32>
    %186 = arith.addf %183, %185 : vector<16x32xf32>
    %c0_80 = arith.constant 0 : index
    %c0_81 = arith.constant 0 : index
    %187 = vector.load %arg15[%c0_80, %c0_81] : memref<16x32xf32, #tpu.memory_space<vmem>>, vector<16x32xf32>
    tpu.vector_store %arg15[%c0_80, %c0_81], %186 {strides = array<i32>} : memref<16x32xf32, #tpu.memory_space<vmem>>, vector<16x32xf32>,
    return
  }
}

</mosaic_0001>

<bundles_post_ra>
// kernel: retnet_block_forward.1
= control target key start
LH: loop header
LB: loop body
LE: loop exit
PB: predicated region body
PF: predicated region fallthrough
CT: control target
= control target key end

     0   :  { %20 = vsyncpa [#allocation3], 0  ;;  %s3004_s0 = inlined_call_operand.vmem [shape: f32[16,32], index: 0, kind: input, shape index: {}]   ;;  %s3005_s1 = inlined_call_operand.vmem [shape: f32[32,96], index: 1, kind: input, shape index: {}]   ;;  %s3006_s2 = inlined_call_operand.vmem [shape: f32[1,96], index: 2, kind: input, shape index: {}]   ;;  %s3007_s3 = inlined_call_operand.vmem [shape: f32[32,32], index: 3, kind: input, shape index: {}]   ;;  %s3008_s4 = inlined_call_operand.vmem [shape: f32[1,32], index: 4, kind: input, shape index: {}]   ;;  %s3009_s5 = inlined_call_operand.vmem [shape: f32[32,64], index: 5, kind: input, shape index: {}]   ;;  %s3010_s6 = inlined_call_operand.hbm [shape: f32[1,64], index: 6, kind: input, shape index: {}]   ;;  %s3011_s7 = inlined_call_operand.vmem [shape: f32[64,32], index: 7, kind: input, shape index: {}]   ;;  %s3012_s8 = inlined_call_operand.hbm [shape: f32[1,32], index: 8, kind: input, shape index: {}]   ;;  %s3013_s9 = inlined_call_operand.vmem [shape: f32[16,32], index: 9, kind: input, shape index: {}]   ;;  %s3014_s10 = inlined_call_operand.vmem [shape: f32[16,32], index: 10, kind: input, shape index: {}]   ;;  %s3015_s11 = inlined_call_operand.hbm [shape: f32[16,32], index: 11, kind: input, shape index: {}]   ;;  %s3016_s12 = inlined_call_operand.hbm [shape: f32[16,32], index: 12, kind: input, shape index: {}]   ;;  %s3017_s13 = inlined_call_operand.vmem [shape: f32[64,32], index: 13, kind: input, shape index: {}]   ;;  %s3018_s14 = inlined_call_operand.vmem [shape: f32[4,8,8], index: 14, kind: input, shape index: {}]   ;;  %s3019_s15 = inlined_call_operand.hbm [shape: f32[16,32], index: 15, kind: output, shape index: {}]  }
   0x1   :  { %21 = vsyncpa [#allocation6], 0 }
   0x2   :  { %22 = vsyncpa [#allocation9], 0 }
   0x3   :  { %23 = vsyncpa [#allocation4], 0  ;;  %s2520_s18 = smov [#allocation5]   ;;  %s2521_s20 = smov [#allocation2]  }
   0x4   :  { %s54_s19 = sshll.u32 %s2520_s18, 4  ;;  %s42_s21 = sshll.u32 %s2521_s20, 4  ;;  %s55_s19 = int_to_ptr.vmem [resolvable:$true] %s54_s19  ;;  %s43_s21 = int_to_ptr.vmem [resolvable:$true] %s42_s21 }
   0x5   :  { %s2420_s22 = scalar_lea.vmem %s55_s19, 16  ;;  %s2424_s23 = scalar_lea.vmem %s55_s19, 32 }
   0x6   :  { %p2421_p0 = scmp.ne.s32.totalorder %s55_s19, %s2420_s22  ;;  %p2425_p1 = scmp.lt.s32.totalorder %s55_s19, %s55_s19 }
   0x7   :  { %p2426_p2 = scmp.lt.s32.totalorder %s2424_s23, %s2420_s22 }
   0x9   :  { %p2427_p3 = por %p2426_p2, %p2425_p1 }
   0xb   :  { %p2428_p4 = pnand %p2427_p3, %p2421_p0 }
   0xd   :  { %2431 = shalt.err (!%p2428_p4)
}
   0xe   :  { %57 = dma.hbm_to_vmem [thread:$0]  %s3012_s8, 16, %s55_s19, [#allocation6]  }
   0xf   :  { %s2440_s26 = scalar_lea.vmem %s43_s21, 16  ;;  %s2444_s27 = scalar_lea.vmem %s43_s21, 32 }
  0x10   :  { %p2441_p5 = scmp.ne.s32.totalorder %s43_s21, %s2440_s26  ;;  %p2445_p6 = scmp.lt.s32.totalorder %s43_s21, %s43_s21 }
  0x11   :  { %p2446_p7 = scmp.lt.s32.totalorder %s2444_s27, %s2440_s26 }
  0x13   :  { %p2447_p8 = por %p2446_p7, %p2445_p6 }
  0x15   :  { %p2448_p9 = pnand %p2447_p8, %p2441_p5 }
  0x17   :  { %2451 = shalt.err (!%p2448_p9)
}
  0x18   :  { %45 = dma.hbm_to_vmem [thread:$0]  %s3010_s6, 16, %s43_s21, [#allocation3]  }
  0x19   :  { %s2522_s30 = smov [#allocation7]  }
  0x1a   :  { %s67_s16 = sshll.u32 %s2522_s30, 4  ;;  %s68_s16 = int_to_ptr.vmem [resolvable:$true] %s67_s16 }
  0x1b   :  { %s2460_s17 = scalar_lea.vmem %s68_s16, 256  ;;  %p2465_p11 = scmp.lt.s32.totalorder %s68_s16, %s68_s16 }
  0x1c   :  { %p2461_p10 = scmp.ne.s32.totalorder %s68_s16, %s2460_s17  ;;  %p2466_p12 = scmp.lt.s32.totalorder %s2460_s17, %s2460_s17 }
  0x1e   :  { %p2467_p13 = por %p2466_p12, %p2465_p11 }
  0x20   :  { %p2468_p0 = pnand %p2467_p13, %p2461_p10 }
  0x22   :  { %2471 = shalt.err (!%p2468_p0)
}
  0x23   :  { %s2523_s8 = smov 128   ;;  %s2524_s18 = smov 8  }
  0x24   :  { %73 = dma.hbm_to_vmem [thread:$0]  %s3015_s11, 256, %s68_s16, [#allocation6], %s2523_s8, %s2523_s8, %s2524_s18  }
  0x25   :  { %s2525_s6 = smov [#allocation8]  }
  0x26   :  { %s79_s21 = sshll.u32 %s2525_s6, 4  ;;  %s80_s21 = int_to_ptr.vmem [resolvable:$true] %s79_s21 }
  0x27   :  { %s2480_s22 = scalar_lea.vmem %s80_s21, 256  ;;  %p2485_p2 = scmp.lt.s32.totalorder %s80_s21, %s80_s21 }
  0x28   :  { %p2481_p1 = scmp.ne.s32.totalorder %s80_s21, %s2480_s22  ;;  %p2486_p3 = scmp.lt.s32.totalorder %s2480_s22, %s2480_s22 }
  0x2a   :  { %p2487_p4 = por %p2486_p3, %p2485_p2 }
  0x2c   :  { %p2488_p5 = pnand %p2487_p4, %p2481_p1 }
  0x2e   :  { %2491 = shalt.err (!%p2488_p5)
}
  0x2f   :  { %85 = dma.hbm_to_vmem [thread:$0]  %s3016_s12, 256, %s80_s21, [#allocation9], %s2523_s8, %s2523_s8, %s2524_s18  }
  0x30   :  { %2512 = dma.done.wait [#allocation3], 16  }
  0x31   :  { %2513 = vsyncadd [#allocation3], 4294967280 }
  0x32   :  { %2514 = dma.done.wait [#allocation6], 272  }
  0x33   :  { %2515 = vsyncadd [#allocation6], 4294967024 }
  0x34   :  { %2516 = dma.done.wait [#allocation9], 256  }
  0x35   :  { %2517 = vsyncadd [#allocation9], 4294967040  ;;  %vm104_vm0 = vcmask 261120   ;;  %v2644_v0 = vld [vmem:[%s3004_s0] sm:$0xff]  ;;  %v2649_v1 = vld [vmem:[%s3004_s0 + $0x8] sm:$0xff]  ;;  %s2526_s23 = smov 32  }
  0x36   :  { %v105_v2 = vsel %vm104_vm0, %v2644_v0, 0.0  ;;  %v108_v3 = vsel %vm104_vm0, %v2649_v1, 0.0  ;;  %v135_v14 = vld [vmem:[%s3005_s1 + $0x18] sm:$0xff]  ;;  %v134_v15 = vld [vmem:[%s3005_s1 + $0x10] sm:$0xff]  ;;  %v133_v16 = vld [vmem:[%s3005_s1 + $0x8] sm:$0xff]  ;;  %v2527_v31 = vmov 0.0  }
  0x37   :  { %106 = vadd.xlane.f32.xlu0 %v105_v2  ;;  %2214 = vmatprep.subr.mxu1 %v135_v14  ;;  %v132_v17 = vld [vmem:[%s3005_s1] sm:$0xff]  ;;  %vm2528_vm1 = vmmov 0   ;;  %v227_v41 = vld [vmem:[%s3014_s10 + $0x8] sm:$0xff]  ;;  %s2530_s26 = smov 104   ;;  %s2531_s12 = smov 64   ;;  %vm375_vm2 = vcmask 130048  }
  0x38   :  { %2215 = vmatpush3.msra.mxu1 %v135_v14  ;;  %v224_v18 = vld [vmem:[%s3013_s9] sm:$0xff]  ;;  %2244 = vmatprep.subr.mxu0 %v2527_v31  ;;  %v225_v42 = vld [vmem:[%s3013_s9 + $0x8] sm:$0xff]  ;;  %vm364_vm3 = vcmask 64512   ;;  %s2532_s9 = smov 88   ;;  %s2534_s28 = smov 80   ;;  %v277_v56 = vld [vmem:[%s3017_s13 + $0x38] sm:$0xff] }
  0x39   :  { %2216 = vmatprep.subr.mxu1 %v134_v15  ;;  %v226_v19 = vld [vmem:[%s3014_s10] sm:$0xff]  ;;  %2246 = vmatprep.mubr.msk.f32.mxu0 %vm2528_vm1, %v2527_v31  ;;  %s2533_s10 = smov 120   ;;  %s2535_s16 = smov 112   ;;  %v276_v57 = vld [vmem:[%s3017_s13 + $0x30] sm:$0xff]  ;;  %v275_v58 = vld [vmem:[%s3017_s13 + $0x28] sm:$0xff]  ;;  %vm278_vm4 = vcmask 523264  }
  0x3a   :  { %2217 = vmatpush3.msra.mxu1 %v134_v15  ;;  %v2099_v30 = vld [vmem:[%s3006_s2] ss:$0 sm:$0xff]  ;;  %s2529_s2 = smov 96   ;;  %s2536_s20 = smov 72   ;;  %v273_v60 = vld [vmem:[%s3017_s13 + $0x18] sm:$0xff]  ;;  %v272_v61 = vld [vmem:[%s3017_s13 + $0x10] sm:$0xff] }
  0x3b   :  { %109 = vadd.xlane.f32.xlu0 %v108_v3  ;;  %2218 = vmatprep.subr.mxu1 %v133_v16  ;;  %v274_v59 = vld [vmem:[%s3017_s13 + $0x20] sm:$0xff]  ;;  %v271_v62 = vld [vmem:[%s3017_s13 + $0x8] sm:$0xff]  ;;  %v256_v2 = vld [vmem:[#allocation8] sm:$0xff]  ;;  %s2541_s6 = smov 24   ;;  %vm1050_vm5 = vcmask 195584  }
  0x3c   :  { %2219 = vmatpush3.msra.mxu1 %v133_v16  ;;  %v270_v63 = vld [vmem:[%s3017_s13] sm:$0xff]  ;;  %s2537_s13 = smov 56  }
  0x3d   :  { %2220 = vmatprep.subr.mxu1 %v132_v17  ;;  %v257_v3 = vld [vmem:[#allocation8 + $0x8] sm:$0xff] }
  0x3e   :  { %2221 = vmatpush3.msra.mxu1 %v132_v17 }
  0x3f   :  { %2225 = vmatprep.subr.mxu1 %v277_v56 }
  0x51   :  { %234 = vrot.lane.b32.xlu0 %v224_v18, %s2526_s23 }
  0xc0   :  { %v107_v4 = vpop.xlane.xlu0 %106 }
  0xc1   :  { %v112_v5 = vmul.f32 0.03125, %v107_v4 }
  0xc3   :  { %v114_v6 = vsub.f32 %v2644_v0, %v112_v5 }
  0xc4   :  { %v110_v7 = vpop.xlane.xlu0 %109 }
  0xc5   :  { %v113_v8 = vmul.f32 0.03125, %v110_v7  ;;  %v116_v9 = vmul.f32 %v114_v6, %v114_v6 }
  0xc7   :  { %v115_v10 = vsub.f32 %v2649_v1, %v113_v8  ;;  %v118_v11 = vsel %vm104_vm0, %v116_v9, 0.0 }
  0xc8   :  { %119 = vadd.xlane.f32.xlu1 %v118_v11  ;;  %v235_v35 = vpop.permute.xlu0 %234 }
  0xc9   :  { %v117_v12 = vmul.f32 %v115_v10, %v115_v10 }
  0xcb   :  { %v121_v13 = vsel %vm104_vm0, %v117_v12, 0.0 }
  0xcc   :  { %122 = vadd.xlane.f32.xlu1 %v121_v13 }
  0xdd   :  { %244 = vrot.lane.b32.xlu1 %v226_v19, %s2526_s23 }
 0x151   :  { %v120_v20 = vpop.xlane.xlu1 %119 }
 0x152   :  { %v124_v21 = vmul.f32 0.03125, %v120_v20 }
 0x154   :  { %v126_v22 = vadd.f32 1e-05, %v124_v21 }
 0x155   :  { %v123_v23 = vpop.xlane.xlu1 %122 }
 0x156   :  { %2388 = vrsqrt.f32 %v126_v22  ;;  %v125_v24 = vmul.f32 0.03125, %v123_v23 }
 0x158   :  { %v127_v25 = vadd.f32 1e-05, %v125_v24 }
 0x159   :  { %v245_v39 = vpop.permute.xlu1 %244 }
 0x15a   :  { %2390 = vrsqrt.f32 %v127_v25 }
 0x163   :  { %v2389_v26 = vpop.eup %2388 }
 0x164   :  { %v130_v27 = vmul.f32 %v2389_v26, %v114_v6 }
 0x166   :  { %2222 = vmatprep.mubr.msk.f32.mxu1 %vm104_vm0, %v130_v27 }
 0x167   :  { %v2391_v28 = vpop.eup %2390 }
 0x168   :  { %v131_v29 = vmul.f32 %v2391_v28, %v115_v10 }
 0x16a   :  { %2223 = vmatmul.mubr.msk.f32.vlgmr.msra.gmra.mxu1 %vm104_vm0, %v131_v29 }
 0x16b   :  { %2226 = vmatpush3.msra.mxu1 %v277_v56 }
 0x16c   :  { %2227 = vmatprep.subr.mxu1 %v276_v57 }
 0x16d   :  { %2228 = vmatpush3.msra.mxu1 %v276_v57 }
 0x16e   :  { %2229 = vmatprep.subr.mxu1 %v275_v58 }
 0x16f   :  { %2230 = vmatpush3.msra.mxu1 %v275_v58 }
 0x170   :  { %2231 = vmatprep.subr.mxu1 %v274_v59 }
 0x171   :  { %2232 = vmatpush3.msra.mxu1 %v274_v59 }
 0x172   :  { %2233 = vmatprep.subr.mxu1 %v273_v60 }
 0x173   :  { %2234 = vmatpush3.msra.mxu1 %v273_v60 }
 0x174   :  { %2235 = vmatprep.subr.mxu1 %v272_v61 }
 0x175   :  { %2236 = vmatpush3.msra.mxu1 %v272_v61  ;;  %v2109_v61 = vld [vmem:[%s3018_s14 + $0x8] sm:$0xff] }
 0x176   :  { %2237 = vmatprep.subr.mxu1 %v271_v62 }
 0x177   :  { %2238 = vmatpush3.msra.mxu1 %v271_v62 }
 0x178   :  { %2239 = vmatprep.subr.mxu1 %v270_v63 }
 0x179   :  { %2240 = vmatpush3.msra.mxu1 %v270_v63 }
 0x17a   :  { %2259 = vmatprep.subr.mxu1 %v2527_v31 }
 0x22a   :  { %v2224_v32 = vpop.f32.mrf.mxu1 }
 0x22b   :  { %v2685_v33 = vadd.f32 %v2224_v32, %v2099_v30 }
 0x22c   :  { %v215_v34 = vpop.f32.mrf.mxu1 }
 0x22d   :  { %v2689_v36 = vadd.f32 %v2099_v30, %v215_v34  ;;  %v2727_v54 = vmul.f32 %v227_v41, %v2685_v33  ;;  %v2730_v55 = vmul.f32 %v225_v42, %v2685_v33  ;;  %v259_v5 = vmul.f32 %v257_v3, %v2685_v33  ;;  %v2113_v3 = vld [vmem:[%s3018_s14 + $0x10] sm:$0xff] }
 0x22f   :  { %v240_v37 = vmul.f32 %v235_v35, %v2689_v36  ;;  %v2693_v38 = vmul.f32 %v226_v19, %v2689_v36  ;;  %v250_v40 = vmul.f32 %v245_v39, %v2689_v36  ;;  %v228_v49 = vmul.f32 %v224_v18, %v2689_v36 }
 0x230   :  { %v258_v4 = vmul.f32 %v256_v2, %v2689_v36 }
 0x231   :  { %361 = vrot.lane.b32.xlu0 %v2693_v38, %s2524_s18  ;;  %367 = vrot.lane.b32.xlu1 %v240_v37, %s2529_s2 }
 0x235   :  { %246 = vrot.lane.b32.xlu0 %v227_v41, %s2526_s23  ;;  %371 = vrot.lane.b32.xlu1 %v250_v40, %s2530_s26 }
 0x239   :  { %236 = vrot.lane.b32.xlu1 %v225_v42, %s2526_s23  ;;  %v252_v42 = vld [vmem:[#allocation7] sm:$0xff] }
 0x23d   :  { %455 = vrot.lane.b32.xlu1 %v2689_v36, %s2531_s12 }
 0x2a3   :  { %v368_v43 = vpop.permute.xlu1 %367  ;;  %v362_v44 = vpop.permute.xlu0 %361 }
 0x2a4   :  { %v365_v50 = vsel %vm364_vm3, %v228_v49, %v362_v44  ;;  %v254_v44 = vmul.f32 %v252_v42, %v2689_v36 }
 0x2a7   :  { %v372_v45 = vpop.permute.xlu1 %371  ;;  %v247_v46 = vpop.permute.xlu0 %246 }
 0x2a8   :  { %v2711_v47 = vmul.f32 %v247_v46, %v2685_v33  ;;  %v374_v48 = vsel %vm364_vm3, %v368_v43, %v372_v45  ;;  %v253_v43 = vld [vmem:[#allocation7 + $0x8] sm:$0xff] }
 0x2a9   :  { %2245 = vmatpush3.xpose.msk.msra.mxu0 %vm375_vm2, %v374_v48  ;;  %v255_v45 = vmul.f32 %v253_v43, %v2685_v33 }
 0x2aa   :  { %1062 = vrot.lane.b32.xlu0 %v2711_v47, %s2530_s26  ;;  %2249 = vmatprep.subr.mxu0 %v2527_v31 }
 0x2ab   :  { %v237_v51 = vpop.permute.xlu1 %236 }
 0x2ac   :  { %v241_v52 = vmul.f32 %v237_v51, %v2685_v33  ;;  %2247 = vmatmul.mubr.msk.f32.vlgmr.msra.gmra.mxu0 %vm375_vm2, %v365_v50 }
 0x2ad   :  { %2251 = vmatprep.mubr.msk.f32.mxu0 %vm2528_vm1, %v2527_v31 }
 0x2ae   :  { %1058 = vrot.lane.b32.xlu1 %v241_v52, %s2529_s2  ;;  %1225 = vrot.lane.b32.xlu0 %v241_v52, %s2532_s9 }
 0x2af   :  { %v456_v53 = vpop.permute.xlu1 %455 }
 0x2b0   :  { %2250 = vmatpush3.msra.mxu0 %v456_v53 }
 0x2b1   :  { %2254 = vmatprep.subr.mxu0 %v2527_v31 }
 0x2b2   :  { %1053 = vrot.lane.b32.xlu1 %v2727_v54, %s2524_s18  ;;  %1221 = vrot.lane.b32.xlu0 %v2730_v55, %s2533_s10 }
 0x2b6   :  { %1228 = vrot.lane.b32.xlu1 %v2711_v47, %s2529_s2  ;;  %536 = vrot.lane.b32.xlu0 %v240_v37, %s2532_s9 }
 0x2ba   :  { %539 = vrot.lane.b32.xlu1 %v250_v40, %s2529_s2  ;;  %532 = vrot.lane.b32.xlu0 %v228_v49, %s2533_s10 }
 0x2be   :  { %705 = vrot.lane.b32.xlu1 %v240_v37, %s2534_s28  ;;  %708 = vrot.lane.b32.xlu0 %v250_v40, %s2532_s9 }
 0x2c2   :  { %698 = vrot.lane.b32.xlu1 %v228_v49, %s2535_s16  ;;  %701 = vrot.lane.b32.xlu0 %v2693_v38, %s2533_s10 }
 0x2c6   :  { %874 = vrot.lane.b32.xlu1 %v240_v37, %s2536_s20  ;;  %877 = vrot.lane.b32.xlu0 %v250_v40, %s2534_s28 }
 0x2ca   :  { %867 = vrot.lane.b32.xlu1 %v228_v49, %s2530_s26  ;;  %870 = vrot.lane.b32.xlu0 %v2693_v38, %s2535_s16 }
 0x2ce   :  { %1392 = vrot.lane.b32.xlu1 %v241_v52, %s2534_s28  ;;  %1395 = vrot.lane.b32.xlu0 %v2711_v47, %s2532_s9 }
 0x2d2   :  { %1385 = vrot.lane.b32.xlu1 %v2730_v55, %s2535_s16  ;;  %1388 = vrot.lane.b32.xlu0 %v2727_v54, %s2533_s10  ;;  %s2538_s10 = smov 48  }
 0x2d6   :  { %1559 = vrot.lane.b32.xlu1 %v241_v52, %s2536_s20  ;;  %1562 = vrot.lane.b32.xlu0 %v2711_v47, %s2534_s28  ;;  %s2539_s28 = smov 40  }
 0x2da   :  { %1552 = vrot.lane.b32.xlu1 %v2730_v55, %s2530_s26  ;;  %1555 = vrot.lane.b32.xlu0 %v2727_v54, %s2535_s16 }
 0x2de   :  { %262 = vrot.lane.b32.xlu1 %v258_v4, %s2526_s23  ;;  %264 = vrot.lane.b32.xlu0 %v259_v5, %s2526_s23 }
 0x2e2   :  { %622 = vrot.lane.b32.xlu1 %v2689_v36, %s2537_s13  ;;  %791 = vrot.lane.b32.xlu0 %v2689_v36, %s2538_s10 }
 0x2e6   :  { %960 = vrot.lane.b32.xlu1 %v2689_v36, %s2539_s28  ;;  %1144 = vrot.lane.b32.xlu0 %v2685_v33, %s2531_s12 }
 0x2ea   :  { %1309 = vrot.lane.b32.xlu1 %v2685_v33, %s2537_s13  ;;  %1476 = vrot.lane.b32.xlu0 %v2685_v33, %s2538_s10 }
 0x2ee   :  { %1643 = vrot.lane.b32.xlu1 %v2685_v33, %s2539_s28  ;;  %v2828_v33 = vld [vmem:[%s3018_s14] sm:$0xff] }
 0x31c   :  { %v1063_v6 = vpop.permute.xlu0 %1062 }
 0x320   :  { %v1059_v7 = vpop.permute.xlu1 %1058  ;;  %v1226_v8 = vpop.permute.xlu0 %1225 }
 0x321   :  { %v2802_v9 = vsel %vm364_vm3, %v1059_v7, %v1063_v6 }
 0x324   :  { %v2804_v10 = vpop.permute.xlu1 %1053  ;;  %v2806_v11 = vpop.permute.xlu0 %1221 }
 0x325   :  { %v1056_v57 = vsel %vm364_vm3, %v2730_v55, %v2804_v10  ;;  %v1224_v58 = vsel %vm364_vm3, %v2806_v11, %v2727_v54 }
 0x328   :  { %v1229_v12 = vpop.permute.xlu1 %1228  ;;  %v537_v13 = vpop.permute.xlu0 %536 }
 0x329   :  { %v2809_v14 = vsel %vm364_vm3, %v1226_v8, %v1229_v12  ;;  %v2117_v8 = vld [vmem:[%s3018_s14 + $0x18] sm:$0xff]  ;;  %s2540_s14 = smov 16  }
 0x32c   :  { %v540_v15 = vpop.permute.xlu1 %539  ;;  %v533_v16 = vpop.permute.xlu0 %532 }
 0x32d   :  { %v542_v17 = vsel %vm364_vm3, %v537_v13, %v540_v15  ;;  %v535_v53 = vsel %vm364_vm3, %v533_v16, %v2693_v38 }
 0x330   :  { %v706_v18 = vpop.permute.xlu1 %705  ;;  %v709_v19 = vpop.permute.xlu0 %708 }
 0x331   :  { %v711_v20 = vsel %vm364_vm3, %v706_v18, %v709_v19 }
 0x334   :  { %v699_v21 = vpop.permute.xlu1 %698  ;;  %v702_v22 = vpop.permute.xlu0 %701 }
 0x335   :  { %v704_v23 = vsel %vm364_vm3, %v699_v21, %v702_v22 }
 0x338   :  { %v875_v24 = vpop.permute.xlu1 %874  ;;  %v878_v25 = vpop.permute.xlu0 %877 }
 0x339   :  { %v880_v56 = vsel %vm364_vm3, %v875_v24, %v878_v25 }
 0x33c   :  { %v868_v26 = vpop.permute.xlu1 %867  ;;  %v871_v27 = vpop.permute.xlu0 %870 }
 0x33d   :  { %v873_v38 = vsel %vm364_vm3, %v868_v26, %v871_v27 }
 0x340   :  { %v1393_v28 = vpop.permute.xlu1 %1392  ;;  %v1396_v29 = vpop.permute.xlu0 %1395 }
 0x341   :  { %v1398_v30 = vsel %vm364_vm3, %v1393_v28, %v1396_v29 }
 0x344   :  { %v1386_v32 = vpop.permute.xlu1 %1385  ;;  %v1389_v34 = vpop.permute.xlu0 %1388 }
 0x345   :  { %v1391_v35 = vsel %vm364_vm3, %v1386_v32, %v1389_v34 }
 0x348   :  { %v1560_v37 = vpop.permute.xlu1 %1559  ;;  %v1563_v39 = vpop.permute.xlu0 %1562 }
 0x349   :  { %v1565_v55 = vsel %vm364_vm3, %v1560_v37, %v1563_v39 }
 0x34c   :  { %v1553_v40 = vpop.permute.xlu1 %1552  ;;  %v1556_v41 = vpop.permute.xlu0 %1555 }
 0x34d   :  { %v1558_v54 = vsel %vm364_vm3, %v1553_v40, %v1556_v41 }
 0x350   :  { %v263_v46 = vpop.permute.xlu1 %262  ;;  %v265_v47 = vpop.permute.xlu0 %264 }
 0x351   :  { %v268_v48 = vsel %vm104_vm0, %v254_v44, %v263_v46  ;;  %v269_v49 = vsel %vm104_vm0, %v255_v45, %v265_v47 }
 0x352   :  { %2241 = vmatprep.mubr.msk.f32.mxu1 %vm278_vm4, %v268_v48  ;;  %v1753_v48 = vld [vmem:[%s3007_s3 + $0x18] sm:$0xff] }
 0x353   :  { %2242 = vmatmul.mubr.msk.f32.vlgmr.msra.gmra.mxu1 %vm278_vm4, %v269_v49  ;;  %v1752_v49 = vld [vmem:[%s3007_s3 + $0x10] sm:$0xff] }
 0x354   :  { %v623_v50 = vpop.permute.xlu1 %622  ;;  %2261 = vmatprep.mubr.msk.f32.mxu1 %vm2528_vm1, %v2527_v31  ;;  %v792_v4 = vpop.permute.xlu0 %791 }
 0x355   :  { %2260 = vmatpush3.msra.mxu1 %v623_v50  ;;  %v1751_v50 = vld [vmem:[%s3007_s3 + $0x8] sm:$0xff] }
 0x356   :  { %2269 = vmatprep.subr.mxu1 %v2527_v31 }
 0x358   :  { %v1145_v13 = vpop.permute.xlu0 %1144 }
 0x35c   :  { %v1477_v21 = vpop.permute.xlu0 %1476 }
 0x36c   :  { %v448_v36 = vpop.f32.mrf.mxu0 }
 0x36d   :  { %v453_v51 = vmul.f32 %v2828_v33, %v448_v36 }
 0x36e   :  { %v2248_v52 = vpop.f32.mrf.mxu0 }
 0x36f   :  { %2252 = vmatmul.mubr.msk.f32.vlgmr.msra.gmra.mxu0 %vm364_vm3, %v453_v51 }
 0x370   :  { %2255 = vmatpush3.xpose.msk.msra.mxu0 %vm375_vm2, %v542_v17  ;;  %2256 = vmatprep.mubr.msk.f32.mxu0 %vm2528_vm1, %v2527_v31 }
 0x371   :  { %2264 = vmatprep.subr.mxu0 %v2527_v31 }
 0x373   :  { %2257 = vmatmul.mubr.msk.f32.vlgmr.msra.gmra.mxu0 %vm375_vm2, %v535_v53 }
 0x374   :  { %2265 = vmatpush3.xpose.msk.msra.mxu0 %vm375_vm2, %v711_v20  ;;  %2266 = vmatprep.mubr.msk.f32.mxu0 %vm2528_vm1, %v2527_v31 }
 0x375   :  { %2274 = vmatprep.subr.mxu0 %v2527_v31 }
 0x377   :  { %2267 = vmatmul.mubr.msk.f32.vlgmr.msra.gmra.mxu0 %vm375_vm2, %v704_v23 }
 0x378   :  { %2275 = vmatpush3.xpose.msk.msra.mxu0 %vm375_vm2, %v880_v56  ;;  %2276 = vmatprep.mubr.msk.f32.mxu0 %vm2528_vm1, %v2527_v31 }
 0x379   :  { %2284 = vmatprep.subr.mxu0 %v2527_v31 }
 0x37b   :  { %2277 = vmatmul.mubr.msk.f32.vlgmr.msra.gmra.mxu0 %vm375_vm2, %v873_v38 }
 0x37c   :  { %2285 = vmatpush3.xpose.msk.msra.mxu0 %vm375_vm2, %v2802_v9  ;;  %2286 = vmatprep.mubr.msk.f32.mxu0 %vm2528_vm1, %v2527_v31  ;;  %v961_v9 = vpop.permute.xlu1 %960 }
 0x37d   :  { %2294 = vmatprep.subr.mxu0 %v2527_v31 }
 0x37f   :  { %2287 = vmatmul.mubr.msk.f32.vlgmr.msra.gmra.mxu0 %vm375_vm2, %v1056_v57 }
 0x380   :  { %2295 = vmatpush3.xpose.msk.msra.mxu0 %vm375_vm2, %v2809_v14  ;;  %2296 = vmatprep.mubr.msk.f32.mxu0 %vm2528_vm1, %v2527_v31  ;;  %v1310_v17 = vpop.permute.xlu1 %1309 }
 0x381   :  { %2304 = vmatprep.subr.mxu0 %v2527_v31 }
 0x383   :  { %2297 = vmatmul.mubr.msk.f32.vlgmr.msra.gmra.mxu0 %vm375_vm2, %v1224_v58 }
 0x384   :  { %2305 = vmatpush3.xpose.msk.msra.mxu0 %vm375_vm2, %v1398_v30  ;;  %2306 = vmatprep.mubr.msk.f32.mxu0 %vm2528_vm1, %v2527_v31  ;;  %v1644_v25 = vpop.permute.xlu1 %1643 }
 0x385   :  { %2314 = vmatprep.subr.mxu0 %v2527_v31 }
 0x387   :  { %2307 = vmatmul.mubr.msk.f32.vlgmr.msra.gmra.mxu0 %vm375_vm2, %v1391_v35 }
 0x388   :  { %2315 = vmatpush3.xpose.msk.msra.mxu0 %vm375_vm2, %v1565_v55  ;;  %2316 = vmatprep.mubr.msk.f32.mxu0 %vm2528_vm1, %v2527_v31 }
 0x389   :  { %2324 = vmatprep.subr.mxu0 %v1753_v48 }
 0x38b   :  { %2317 = vmatmul.mubr.msk.f32.vlgmr.msra.gmra.mxu0 %vm375_vm2, %v1558_v54 }
 0x38c   :  { %2325 = vmatpush3.msra.mxu0 %v1753_v48  ;;  %v1982_v48 = vld [vmem:[%s3011_s7 + $0x20] sm:$0xff] }
 0x38d   :  { %2326 = vmatprep.subr.mxu0 %v1752_v49 }
 0x38e   :  { %2327 = vmatpush3.msra.mxu0 %v1752_v49  ;;  %v1981_v49 = vld [vmem:[%s3011_s7 + $0x18] sm:$0xff] }
 0x38f   :  { %2328 = vmatprep.subr.mxu0 %v1751_v50 }
 0x390   :  { %2329 = vmatpush3.msra.mxu0 %v1751_v50  ;;  %v1980_v50 = vld [vmem:[%s3011_s7 + $0x10] sm:$0xff] }
 0x413   :  { %v2243_v29 = vpop.f32.mrf.mxu1 }
 0x415   :  { %v351_v30 = vpop.f32.mrf.mxu1 }
 0x42f   :  { %v2880_v59 = vpop.f32.mrf.mxu0 }
 0x431   :  { %v2253_v60 = vpop.f32.mrf.mxu0 }
 0x433   :  { %v615_v62 = vpop.f32.mrf.mxu0 }
 0x434   :  { %v621_v63 = vmul.f32 %v2109_v61, %v615_v62 }
 0x435   :  { %v2258_v2 = vpop.f32.mrf.mxu0 }
 0x436   :  { %2262 = vmatmul.mubr.msk.f32.vlgmr.msra.gmra.mxu1 %vm364_vm3, %v621_v63 }
 0x437   :  { %2270 = vmatpush3.msra.mxu1 %v792_v4  ;;  %v784_v5 = vpop.f32.mrf.mxu0  ;;  %2271 = vmatprep.mubr.msk.f32.mxu1 %vm2528_vm1, %v2527_v31 }
 0x438   :  { %v790_v6 = vmul.f32 %v2113_v3, %v784_v5  ;;  %2279 = vmatprep.subr.mxu1 %v2527_v31 }
 0x439   :  { %v2268_v7 = vpop.f32.mrf.mxu0 }
 0x43a   :  { %2272 = vmatmul.mubr.msk.f32.vlgmr.msra.gmra.mxu1 %vm364_vm3, %v790_v6 }
 0x43b   :  { %2280 = vmatpush3.msra.mxu1 %v961_v9  ;;  %v953_v10 = vpop.f32.mrf.mxu0  ;;  %2281 = vmatprep.mubr.msk.f32.mxu1 %vm2528_vm1, %v2527_v31 }
 0x43c   :  { %v959_v11 = vmul.f32 %v2117_v8, %v953_v10  ;;  %2289 = vmatprep.subr.mxu1 %v2527_v31 }
 0x43d   :  { %v2278_v12 = vpop.f32.mrf.mxu0 }
 0x43e   :  { %2282 = vmatmul.mubr.msk.f32.vlgmr.msra.gmra.mxu1 %vm364_vm3, %v959_v11  ;;  %v2135_v12 = vld [vmem:[%s3008_s4] ss:$0 sm:$0xff] }
 0x43f   :  { %2290 = vmatpush3.msra.mxu1 %v1145_v13  ;;  %v1138_v14 = vpop.f32.mrf.mxu0  ;;  %2291 = vmatprep.mubr.msk.f32.mxu1 %vm2528_vm1, %v2527_v31 }
 0x440   :  { %v1142_v15 = vmul.f32 %v1138_v14, %v2828_v33  ;;  %2299 = vmatprep.subr.mxu1 %v2527_v31  ;;  %v1750_v33 = vld [vmem:[%s3007_s3] sm:$0xff] }
 0x441   :  { %v2288_v16 = vpop.f32.mrf.mxu0  ;;  %2330 = vmatprep.subr.mxu0 %v1750_v33 }
 0x442   :  { %2292 = vmatmul.mubr.msk.f32.vlgmr.msra.gmra.mxu1 %vm364_vm3, %v1142_v15  ;;  %2331 = vmatpush3.msra.mxu0 %v1750_v33  ;;  %v1979_v33 = vld [vmem:[%s3011_s7 + $0x8] sm:$0xff] }
 0x443   :  { %2300 = vmatpush3.msra.mxu1 %v1310_v17  ;;  %v1304_v18 = vpop.f32.mrf.mxu0  ;;  %2301 = vmatprep.mubr.msk.f32.mxu1 %vm2528_vm1, %v2527_v31 }
 0x444   :  { %v1308_v19 = vmul.f32 %v2109_v61, %v1304_v18  ;;  %2309 = vmatprep.subr.mxu1 %v2527_v31 }
 0x445   :  { %v2298_v20 = vpop.f32.mrf.mxu0 }
 0x446   :  { %2302 = vmatmul.mubr.msk.f32.vlgmr.msra.gmra.mxu1 %vm364_vm3, %v1308_v19 }
 0x447   :  { %2310 = vmatpush3.msra.mxu1 %v1477_v21  ;;  %v1471_v22 = vpop.f32.mrf.mxu0  ;;  %2311 = vmatprep.mubr.msk.f32.mxu1 %vm2528_vm1, %v2527_v31 }
 0x448   :  { %v1475_v23 = vmul.f32 %v2113_v3, %v1471_v22  ;;  %2319 = vmatprep.subr.mxu1 %v2527_v31 }
 0x449   :  { %v2308_v24 = vpop.f32.mrf.mxu0 }
 0x44a   :  { %2312 = vmatmul.mubr.msk.f32.vlgmr.msra.gmra.mxu1 %vm364_vm3, %v1475_v23 }
 0x44b   :  { %2320 = vmatpush3.msra.mxu1 %v1644_v25  ;;  %v1638_v26 = vpop.f32.mrf.mxu0  ;;  %2321 = vmatprep.mubr.msk.f32.mxu1 %vm2528_vm1, %v2527_v31 }
 0x44c   :  { %v1642_v27 = vmul.f32 %v2117_v8, %v1638_v26 }
 0x44d   :  { %v2318_v28 = vpop.f32.mrf.mxu0 }
 0x44e   :  { %2322 = vmatmul.mubr.msk.f32.vlgmr.msra.gmra.mxu1 %vm364_vm3, %v1642_v27  ;;  %v1875_v28 = vld [vmem:[%s3009_s5 + $0x18] sm:$0xff] }
 0x44f   :  { %2335 = vmatprep.subr.mxu1 %v1875_v28 }
 0x450   :  { %2336 = vmatpush3.msra.mxu1 %v1875_v28 }
 0x4f6   :  { %v694_v32 = vpop.f32.mrf.mxu1 }
 0x4f7   :  { %1037 = vrot.lane.b32.xlu0 %v694_v32, %s2524_s18  ;;  %v1872_v32 = vld [vmem:[%s3009_s5] sm:$0xff] }
 0x4f8   :  { %v2263_v34 = vpop.f32.mrf.mxu1 }
 0x4fa   :  { %v863_v35 = vpop.f32.mrf.mxu1 }
 0x4fb   :  { %1041 = vrot.lane.b32.xlu1 %v863_v35, %s2540_s14 }
 0x4fc   :  { %v2273_v37 = vpop.f32.mrf.mxu1 }
 0x4fe   :  { %v1032_v39 = vpop.f32.mrf.mxu1 }
 0x4ff   :  { %1045 = vrot.lane.b32.xlu1 %v1032_v39, %s2541_s6 }
 0x500   :  { %v2283_v40 = vpop.f32.mrf.mxu1 }
 0x502   :  { %v1216_v41 = vpop.f32.mrf.mxu1 }
 0x504   :  { %v2293_v31 = vpop.f32.mrf.mxu1 }
 0x506   :  { %v1381_v42 = vpop.f32.mrf.mxu1 }
 0x507   :  { %1720 = vrot.lane.b32.xlu0 %v1381_v42, %s2524_s18 }
 0x508   :  { %v2303_v43 = vpop.f32.mrf.mxu1 }
 0x50a   :  { %v1548_v44 = vpop.f32.mrf.mxu1 }
 0x50b   :  { %1724 = vrot.lane.b32.xlu0 %v1548_v44, %s2540_s14 }
 0x50c   :  { %v2313_v45 = vpop.f32.mrf.mxu1 }
 0x50d   :  { %v1985_v45 = vld [vmem:[%s3011_s7 + $0x38] sm:$0xff] }
 0x50e   :  { %v1715_v46 = vpop.f32.mrf.mxu1  ;;  %2346 = vmatprep.subr.mxu0 %v1985_v45 }
 0x50f   :  { %1728 = vrot.lane.b32.xlu1 %v1715_v46, %s2541_s6  ;;  %v1984_v46 = vld [vmem:[%s3011_s7 + $0x30] sm:$0xff] }
 0x510   :  { %v2323_v47 = vpop.f32.mrf.mxu1 }
 0x511   :  { %v1983_v47 = vld [vmem:[%s3011_s7 + $0x28] sm:$0xff] }
 0x569   :  { %v1038_v36 = vpop.permute.xlu0 %1037 }
 0x56a   :  { %v1048_v52 = vsel %vm364_vm3, %v2880_v59, %v1038_v36  ;;  %v1978_v36 = vld [vmem:[%s3011_s7] sm:$0xff]  ;;  %s2542_s7 = smov [#allocation10]  }
 0x56b   :  { %s2085_s27 = sshll.u32 %s2542_s7, 4  ;;  %s2086_s27 = int_to_ptr.vmem [resolvable:$true] %s2085_s27 }
 0x56c   :  { %s2492_s3 = scalar_lea.vmem %s2086_s27, 256  ;;  %p2497_p7 = scmp.lt.s32.totalorder %s2086_s27, %s2086_s27 }
 0x56d   :  { %v1042_v51 = vpop.permute.xlu1 %1041  ;;  %p2493_p6 = scmp.ne.s32.totalorder %s2086_s27, %s2492_s3  ;;  %p2498_p8 = scmp.lt.s32.totalorder %s2492_s3, %s2492_s3 }
 0x56e   :  { %v1049_v53 = vsel %vm375_vm2, %v1048_v52, %v1042_v51  ;;  %v2136_v51 = vld [vmem:[#allocation2] ss:$0 sm:$0xff] }
 0x56f   :  { %p2499_p9 = por %p2498_p8, %p2497_p7 }
 0x571   :  { %v1046_v56 = vpop.permute.xlu1 %1045  ;;  %p2500_p10 = pnand %p2499_p9, %p2493_p6 }
 0x572   :  { %v1051_v38 = vsel %vm1050_vm5, %v1049_v53, %v1046_v56 }
 0x573   :  { %v1734_v57 = vadd.f32 %v1051_v38, %v351_v30  ;;  %v1873_v30 = vld [vmem:[%s3009_s5 + $0x8] sm:$0xff] }
 0x575   :  { %v2131_v58 = vmul.f32 -1.442695, %v1734_v57 }
 0x577   :  { %2392 = vpow2.f32 %v2131_v58 }
 0x579   :  { %v1721_v55 = vpop.permute.xlu0 %1720 }
 0x57a   :  { %v1731_v60 = vsel %vm364_vm3, %v1216_v41, %v1721_v55 }
 0x57d   :  { %v1725_v54 = vpop.permute.xlu0 %1724 }
 0x57e   :  { %v1732_v61 = vsel %vm375_vm2, %v1731_v60, %v1725_v54 }
 0x581   :  { %v1729_v62 = vpop.permute.xlu1 %1728 }
 0x582   :  { %v1733_v63 = vsel %vm1050_vm5, %v1732_v61, %v1729_v62 }
 0x583   :  { %v1735_v2 = vadd.f32 %v2243_v29, %v1733_v63  ;;  %v1874_v29 = vld [vmem:[%s3009_s5 + $0x10] sm:$0xff] }
 0x584   :  { %v2393_v3 = vpop.eup %2392  ;;  %2337 = vmatprep.subr.mxu1 %v1874_v29 }
 0x585   :  { %v1742_v4 = vadd.f32 1.0, %v2393_v3  ;;  %v2132_v5 = vmul.f32 -1.442695, %v1735_v2  ;;  %2338 = vmatpush3.msra.mxu1 %v1874_v29 }
 0x586   :  { %2339 = vmatprep.subr.mxu1 %v1873_v30 }
 0x587   :  { %2394 = vrcp.f32 %v1742_v4  ;;  %2340 = vmatpush3.msra.mxu1 %v1873_v30 }
 0x588   :  { %2396 = vpow2.f32 %v2132_v5  ;;  %2341 = vmatprep.subr.mxu1 %v1872_v32  ;;  %v2143_v5 = vld [vmem:[#allocation5] ss:$0 sm:$0xff] }
 0x589   :  { %2342 = vmatpush3.msra.mxu1 %v1872_v32 }
 0x594   :  { %v2395_v59 = vpop.eup %2394 }
 0x595   :  { %v2397_v6 = vpop.eup %2396  ;;  %v1748_v7 = vmul.f32 %v2395_v59, %v1734_v57 }
 0x596   :  { %v1743_v8 = vadd.f32 1.0, %v2397_v6 }
 0x597   :  { %2332 = vmatprep.mubr.msk.f32.mxu0 %vm104_vm0, %v1748_v7 }
 0x598   :  { %2398 = vrcp.f32 %v1743_v8 }
 0x5a5   :  { %v2399_v9 = vpop.eup %2398 }
 0x5a6   :  { %v1749_v10 = vmul.f32 %v2399_v9, %v1735_v2 }
 0x5a8   :  { %2333 = vmatmul.mubr.msk.f32.vlgmr.msra.gmra.mxu0 %vm104_vm0, %v1749_v10 }
 0x5a9   :  { %2347 = vmatpush3.msra.mxu0 %v1985_v45 }
 0x5aa   :  { %2348 = vmatprep.subr.mxu0 %v1984_v46 }
 0x5ab   :  { %2349 = vmatpush3.msra.mxu0 %v1984_v46 }
 0x5ac   :  { %2350 = vmatprep.subr.mxu0 %v1983_v47 }
 0x5ad   :  { %2351 = vmatpush3.msra.mxu0 %v1983_v47 }
 0x5ae   :  { %2352 = vmatprep.subr.mxu0 %v1982_v48 }
 0x5af   :  { %2353 = vmatpush3.msra.mxu0 %v1982_v48 }
 0x5b0   :  { %2354 = vmatprep.subr.mxu0 %v1981_v49 }
 0x5b1   :  { %2355 = vmatpush3.msra.mxu0 %v1981_v49 }
 0x5b2   :  { %2356 = vmatprep.subr.mxu0 %v1980_v50 }
 0x5b3   :  { %2357 = vmatpush3.msra.mxu0 %v1980_v50 }
 0x5b4   :  { %2358 = vmatprep.subr.mxu0 %v1979_v33 }
 0x5b5   :  { %2359 = vmatpush3.msra.mxu0 %v1979_v33 }
 0x5b6   :  { %2360 = vmatprep.subr.mxu0 %v1978_v36 }
 0x5b7   :  { %2361 = vmatpush3.msra.mxu0 %v1978_v36 }
 0x668   :  { %v2334_v11 = vpop.f32.mrf.mxu0 }
 0x669   :  { %v1836_v13 = vadd.f32 %v2334_v11, %v2649_v1 }
 0x66a   :  { %v1826_v14 = vpop.f32.mrf.mxu0 }
 0x66b   :  { %v2941_v15 = vadd.f32 %v2135_v12, %v1836_v13  ;;  %v1835_v16 = vadd.f32 %v1826_v14, %v2644_v0 }
 0x66d   :  { %v2944_v17 = vadd.f32 %v2135_v12, %v1835_v16  ;;  %v1849_v18 = vsel %vm104_vm0, %v2941_v15, 0.0 }
 0x66e   :  { %1850 = vadd.xlane.f32.xlu1 %v1849_v18 }
 0x66f   :  { %v1846_v19 = vsel %vm104_vm0, %v2944_v17, 0.0 }
 0x670   :  { %1847 = vadd.xlane.f32.xlu0 %v1846_v19 }
 0x6f7   :  { %v1851_v20 = vpop.xlane.xlu1 %1850 }
 0x6f8   :  { %v1853_v21 = vmul.f32 0.03125, %v1851_v20 }
 0x6f9   :  { %v1848_v22 = vpop.xlane.xlu0 %1847 }
 0x6fa   :  { %v1852_v23 = vmul.f32 0.03125, %v1848_v22  ;;  %v1855_v1 = vsub.f32 %v2941_v15, %v1853_v21 }
 0x6fc   :  { %v1854_v24 = vsub.f32 %v2944_v17, %v1852_v23  ;;  %v1857_v26 = vmul.f32 %v1855_v1, %v1855_v1 }
 0x6fe   :  { %v1856_v25 = vmul.f32 %v1854_v24, %v1854_v24  ;;  %v1861_v27 = vsel %vm104_vm0, %v1857_v26, 0.0 }
 0x700   :  { %v1858_v0 = vsel %vm104_vm0, %v1856_v25, 0.0 }
 0x701   :  { %1859 = vadd.xlane.f32.xlu0 %v1858_v0 }
 0x705   :  { %1862 = vadd.xlane.f32.xlu0 %v1861_v27 }
 0x78a   :  { %v1860_v34 = vpop.xlane.xlu0 %1859 }
 0x78b   :  { %v1864_v35 = vmul.f32 0.03125, %v1860_v34 }
 0x78d   :  { %v1866_v37 = vadd.f32 1e-05, %v1864_v35 }
 0x78e   :  { %v1863_v39 = vpop.xlane.xlu0 %1862 }
 0x78f   :  { %2400 = vrsqrt.f32 %v1866_v37  ;;  %v1865_v40 = vmul.f32 0.03125, %v1863_v39 }
 0x791   :  { %v1867_v41 = vadd.f32 1e-05, %v1865_v40 }
 0x793   :  { %2402 = vrsqrt.f32 %v1867_v41 }
 0x79c   :  { %v2401_v31 = vpop.eup %2400 }
 0x79d   :  { %v1870_v42 = vmul.f32 %v2401_v31, %v1854_v24 }
 0x79f   :  { %2343 = vmatprep.mubr.msk.f32.mxu1 %vm104_vm0, %v1870_v42 }
 0x7a0   :  { %v2403_v43 = vpop.eup %2402 }
 0x7a1   :  { %v1871_v44 = vmul.f32 %v2403_v43, %v1855_v1 }
 0x7a3   :  { %2344 = vmatmul.mubr.msk.f32.vlgmr.msra.gmra.mxu1 %vm104_vm0, %v1871_v44 }
 0x863   :  { %v2345_v52 = vpop.f32.mrf.mxu1 }
 0x864   :  { %v1961_v53 = vadd.f32 %v2345_v52, %v2136_v51 }
 0x865   :  { %v1955_v56 = vpop.f32.mrf.mxu1 }
 0x866   :  { %v2140_v38 = vmul.f32 -1.442695, %v1961_v53  ;;  %v1956_v57 = vadd.f32 %v2136_v51, %v1955_v56 }
 0x868   :  { %2404 = vpow2.f32 %v2140_v38  ;;  %v2139_v58 = vmul.f32 -1.442695, %v1956_v57 }
 0x86a   :  { %2406 = vpow2.f32 %v2139_v58 }
 0x875   :  { %v2405_v55 = vpop.eup %2404 }
 0x876   :  { %v1971_v54 = vadd.f32 1.0, %v2405_v55 }
 0x877   :  { %v2407_v60 = vpop.eup %2406 }
 0x878   :  { %v1970_v61 = vadd.f32 1.0, %v2407_v60  ;;  %2408 = vrcp.f32 %v1971_v54 }
 0x87a   :  { %2410 = vrcp.f32 %v1970_v61 }
 0x885   :  { %v2409_v62 = vpop.eup %2408 }
 0x886   :  { %v1977_v3 = vmul.f32 %v2409_v62, %v1961_v53 }
 0x887   :  { %v2411_v63 = vpop.eup %2410 }
 0x888   :  { %v1976_v2 = vmul.f32 %v2411_v63, %v1956_v57 }
 0x88a   :  { %2362 = vmatprep.mubr.msk.f32.mxu0 %vm278_vm4, %v1976_v2 }
 0x88b   :  { %2363 = vmatmul.mubr.msk.f32.vlgmr.msra.gmra.mxu0 %vm278_vm4, %v1977_v3 }
 0x94b   :  { %v2364_v4 = vpop.f32.mrf.mxu0 }
 0x94c   :  { %v2068_v59 = vadd.f32 %v2364_v4, %v2941_v15 }
 0x94d   :  { %v2058_v6 = vpop.f32.mrf.mxu0 }
 0x94e   :  { %v2077_v7 = vadd.f32 %v2143_v5, %v2068_v59  ;;  %v2067_v8 = vadd.f32 %v2058_v6, %v2944_v17 }
 0x950   :  { %2079 = vst.msk [vmem:[#allocation10 + $0x8] sm:$0xff] %vm104_vm0, %v2077_v7  ;;  %v2076_v9 = vadd.f32 %v2143_v5, %v2067_v8 }
 0x952   :  { %2078 = vst.msk [vmem:[#allocation10] sm:$0xff] %vm104_vm0, %v2076_v9 }
 0x953   :  { %2503 = shalt.err (!%p2500_p10)
}
 0x954   :  { %2091 = dma.vmem_to_hbm [thread:$0]  %s2086_s27, 256, %s3019_s15, [#allocation4], %s2523_s8, %s2523_s8, %s2524_s18  }
 0x955   :  { %2518 = dma.done.wait [#allocation4], 256  }
 0x956   :  { %2519 = vsyncadd [#allocation4], 4294967040 }
 0x957   :  { %2095 = vsyncpa [#allocation3], 1 }
 0x958   :  { %2096 = vsyncpa [#allocation6], 1 }
 0x959   :  { %2097 = vsyncpa [#allocation9], 1 }
 0x95a   :  { %2098 = vsyncpa [#allocation4], 1 }

</bundles_post_ra>
